<compile_context>
chip_gen: v7x
topology: tpu7x:2x2x1
jax: 0.10.0
libtpu: 0.0.40
codegen_flags: <defaults>
</compile_context>

<pallas_src>
import functools
import math
from dataclasses import dataclass, field

import jax
import jax.numpy as jnp
from jax import lax
from jax.experimental import pallas as pl
from jax.experimental.pallas import tpu as pltpu


COMPUTE_DTYPE = jnp.bfloat16          # MXU operand / HBM-intermediate dtype
VMEM_LIMIT_BYTES = 48 * 1024 * 1024
_DA_SCRATCH_BUDGET = 8 * 1024 * 1024  # cap for the per-chunk exp(delta*A) scratch


# ----------------------------- config ---------------------------------------
@dataclass
class Config:
    d_model: int
    n_layer: int
    vocab_size: int
    d_state: int = 16
    expand: int = 2
    d_conv: int = 4
    pad_vocab_size_multiple: int = 8
    layer_name: str = "Residual Block"
    skip: str = "Gating"           # 'Gating' | 'Additive' | 'No Skip'
    remove_conv: bool = False
    skip_strength: float = 1.0
    normalize_embeddings: bool = False
    d_inner: int = field(init=False)
    dt_rank: int = field(init=False)

    def __post_init__(self):
        self.d_inner = int(self.expand * self.d_model)
        self.dt_rank = math.ceil(self.d_model / 16)
        if self.vocab_size % self.pad_vocab_size_multiple != 0:
            self.vocab_size += (self.pad_vocab_size_multiple
                                - self.vocab_size % self.pad_vocab_size_multiple)
        if self.layer_name not in ("Residual Block", "Residual Block No Skip",
                                   "Residual Block No Skip No Norm"):
            raise ValueError("Layer Not Supported")
        if self.skip not in ("Gating", "Additive", "No Skip"):
            raise ValueError("The chosen value of skip is not supported")


# ----------------------------- helpers --------------------------------------
def _round_up(x, m):
    return (x + m - 1) // m * m


def _pick_chunk(l, target):
    """Largest chunk <= target that divides l (multiple of 8 if < l)."""
    target = max(8, target)
    if l <= target:
        return l
    for c in range(min(target, l), 7, -1):
        if c % 8 == 0 and l % c == 0:
            return c
    return l   # TODO(synk): pad ragged sequence lengths instead of falling back


def _silu(x):
    return x * jax.nn.sigmoid(x)


def _softplus(x):
    # matches torch.nn.functional.softplus (threshold=20)
    return jnp.where(x > 20.0, x, jnp.log1p(jnp.exp(jnp.minimum(x, 20.0))))


# ----------------------------- fused mamba-block kernel ----------------------
def make_block_kernel(cfg: Config, lc: int):
    d_inner, nn = cfg.d_inner, cfg.d_state
    dt_rank, d_conv = cfg.dt_rank, cfg.d_conv
    remove_conv = cfg.remove_conv
    skip, skip_strength = cfg.skip, cfg.skip_strength
    pad = _round_up(max(d_conv - 1, 1), 8)      # conv-tail rows, sublane aligned
    off0 = pad - (d_conv - 1)
    unroll = lc <= 32

    def kernel(x_ref, w_in_ref, w_conv_ref, b_conv_ref, w_x_ref, w_dt_ref,
               b_dt_ref, a_neg_ref, d_ref, y_ref,
               tail_scr, state_scr, u_scr, du_scr, res_scr, bc_scr, da_scr,
               y_scr):
        ci = pl.program_id(1)

        @pl.when(ci == 0)
        def _():
            state_scr[...] = jnp.zeros_like(state_scr)
            if not remove_conv:
                tail_scr[...] = jnp.zeros_like(tail_scr)

        # ---------------- in_proj ----------------
        x = x_ref[0]                                              # (lc, d_model) bf16
        xr = jnp.dot(x, w_in_ref[...],
                     preferred_element_type=jnp.float32)          # (lc, 2*d_inner) f32
        xin = xr[:, :d_inner]
        res = xr[:, d_inner:]

        # ------- causal depthwise conv + SiLU (tail carried across chunks) ----
        if not remove_conv:
            xcat = jnp.concatenate([tail_scr[...], xin], axis=0)  # (pad+lc, d_inner)
            wconv = w_conv_ref[...].astype(jnp.float32)           # (d_conv, d_inner)
            acc = jnp.zeros((lc, d_inner), jnp.float32)
            for k in range(d_conv):                               # static shifted views
                acc = acc + xcat[off0 + k: off0 + k + lc, :] * wconv[k:k + 1, :]
            u = _silu(acc + b_conv_ref[...].astype(jnp.float32))
            tail_scr[...] = xcat[lc:, :]                          # last `pad` rows
        else:
            u = xin

        # ---------------- x_proj / dt_proj ----------------
        u_lp = u.astype(COMPUTE_DTYPE)
        x_dbl = jnp.dot(u_lp, w_x_ref[...],
                        preferred_element_type=jnp.float32)       # (lc, r_pad)
        dt_in = x_dbl[:, :dt_rank].astype(COMPUTE_DTYPE)
        delta = _softplus(
            jnp.dot(dt_in, w_dt_ref[...], preferred_element_type=jnp.float32)
            + b_dt_ref[...].astype(jnp.float32))                  # (lc, d_inner) f32

        # -------- bulk precompute: keeps the serial scan transcendental-free ----
        a_neg = a_neg_ref[...]                                    # (nn, d_inner) f32
        da_scr[...] = jnp.exp(delta[:, None, :] * a_neg[None, :, :])
        u_scr[...] = u
        du_scr[...] = delta * u
        bc_scr[...] = x_dbl[:, dt_rank:dt_rank + 2 * nn]          # [B | C] lane-dense
        if skip == "Gating":
            res_scr[...] = res

        # ---------------- selective scan over the chunk ----------------
        sub = lax.broadcasted_iota(jnp.int32, (nn, 2 * nn), 0)
        lane = lax.broadcasted_iota(jnp.int32, (nn, 2 * nn), 1)
        b_mask = lane == sub
        c_mask = lane == (sub + nn)

        def step(t, carry):
            # lane-dense [B|C] row -> per-state columns via iota mask + lane reduce
            bc_t = bc_scr[pl.ds(t, 1), :]                         # (1, 2*nn)
            bc_sq = jnp.broadcast_to(bc_t, (nn, 2 * nn))
            b_col = jnp.sum(jnp.where(b_mask, bc_sq, 0.0), axis=1, keepdims=True)
            c_col = jnp.sum(jnp.where(c_mask, bc_sq, 0.0), axis=1, keepdims=True)

            state = (da_scr[t] * state_scr[...]
                     + b_col * du_scr[pl.ds(t, 1), :])            # (nn, d_inner)
            state_scr[...] = state
            y_scr[pl.ds(t, 1), :] = jnp.sum(state * c_col, axis=0, keepdims=True)
            return carry

        lax.fori_loop(0, lc, step, 0, unroll=unroll)

        # -------- bulk epilogue: D skip + gating/additive, one dense store ------
        u_full = u_scr[...]
        y = y_scr[...] + u_full * d_ref[...].astype(jnp.float32)
        if skip == "Gating":
            y = y * _silu(res_scr[...])
        elif skip == "Additive":
            y = y + skip_strength * u_full
        y_ref[0] = y.astype(y_ref.dtype)

    return kernel, pad


def mamba_block(x, p, cfg: Config):
    b, l, d_model = x.shape
    d_inner, nn = cfg.d_inner, cfg.d_state
    # bound the chunk so the exp(delta*A) scratch stays within budget
    max_lc = max(8, _DA_SCRATCH_BUDGET // (nn * d_inner * 4))
    lc = _pick_chunk(l, min(128, max_lc))
    kernel, pad = make_block_kernel(cfg, lc)

    y = pl.pallas_call(
        kernel,
        grid=(b, l // lc),
        in_specs=[
            pl.BlockSpec((1, lc, d_model), lambda bi, ci: (bi, ci, 0)),
            pl.BlockSpec(p["W_in"].shape, lambda bi, ci: (0, 0)),
            pl.BlockSpec(p["W_conv"].shape, lambda bi, ci: (0, 0)),
            pl.BlockSpec(p["b_conv"].shape, lambda bi, ci: (0, 0)),
            pl.BlockSpec(p["W_x"].shape, lambda bi, ci: (0, 0)),
            pl.BlockSpec(p["W_dt"].shape, lambda bi, ci: (0, 0)),
            pl.BlockSpec(p["b_dt"].shape, lambda bi, ci: (0, 0)),
            pl.BlockSpec(p["A_neg"].shape, lambda bi, ci: (0, 0)),
            pl.BlockSpec(p["D"].shape, lambda bi, ci: (0, 0)),
        ],
        out_shape=jax.ShapeDtypeStruct((b, l, d_inner), COMPUTE_DTYPE),
        out_specs=pl.BlockSpec((1, lc, d_inner), lambda bi, ci: (bi, ci, 0)),
        scratch_shapes=[
            pltpu.VMEM((pad, d_inner), jnp.float32),       # conv tail carry
            pltpu.VMEM((nn, d_inner), jnp.float32),        # SSM state carry
            pltpu.VMEM((lc, d_inner), jnp.float32),        # u
            pltpu.VMEM((lc, d_inner), jnp.float32),        # delta * u
            pltpu.VMEM((lc, d_inner), jnp.float32),        # res (gating)
            pltpu.VMEM((lc, 2 * nn), jnp.float32),         # [B | C]
            pltpu.VMEM((lc, nn, d_inner), jnp.float32),    # exp(delta*A)
            pltpu.VMEM((lc, d_inner), jnp.float32),        # y chunk accumulator
        ],
        compiler_params=pltpu.CompilerParams(
            dimension_semantics=("parallel", "arbitrary"),
            vmem_limit_bytes=VMEM_LIMIT_BYTES),
        # TODO(synk): at very large d_model/d_inner (v7x, 64 MiB VMEM) tile W_in
        # / the feature axis (emit_pipeline) instead of holding full weights.
    )(x, p["W_in"], p["W_conv"], p["b_conv"], p["W_x"], p["W_dt"],
      p["b_dt"], p["A_neg"], p["D"])

    out = pallas_matmul(y.reshape(b * l, d_inner), p["W_out"],
                        out_dtype=COMPUTE_DTYPE)
    return out.reshape(b, l, d_model)


# ----------------------------- tiled matmul ----------------------------------
def _matmul_kernel(x_ref, w_ref, o_ref, acc_ref):
    @pl.when(pl.program_id(2) == 0)
    def _():
        acc_ref[...] = jnp.zeros_like(acc_ref)

    acc_ref[...] += jnp.dot(x_ref[...], w_ref[...],
                            preferred_element_type=jnp.float32)

    @pl.when(pl.program_id(2) == pl.num_programs(2) - 1)
    def _():
        o_ref[...] = acc_ref[...].astype(o_ref.dtype)


def pallas_matmul(x, w, out_dtype=jnp.float32, tm=256, tn=256, tk=512):
    m, k = x.shape
    k2, n = w.shape
    assert k == k2
    tm = min(tm, _round_up(m, 8))
    tk = min(tk, _round_up(k, 128))
    tn = min(tn, _round_up(n, 128))
    mp, kp, np_ = _round_up(m, tm), _round_up(k, tk), _round_up(n, tn)
    if (mp, kp) != (m, k):
        x = jnp.pad(x, ((0, mp - m), (0, kp - k)))
    if (kp, np_) != (k, n):
        w = jnp.pad(w, ((0, kp - k), (0, np_ - n)))

    out = pl.pallas_call(
        _matmul_kernel,
        grid=(mp // tm, np_ // tn, kp // tk),
        in_specs=[pl.BlockSpec((tm, tk), lambda i, j, kk: (i, kk)),
                  pl.BlockSpec((tk, tn), lambda i, j, kk: (kk, j))],
        out_shape=jax.ShapeDtypeStruct((mp, np_), out_dtype),
        out_specs=pl.BlockSpec((tm, tn), lambda i, j, kk: (i, j)),
        scratch_shapes=[pltpu.VMEM((tm, tn), jnp.float32)],
        compiler_params=pltpu.CompilerParams(
            dimension_semantics=("parallel", "parallel", "arbitrary"),
            vmem_limit_bytes=VMEM_LIMIT_BYTES),
    )(x, w)
    if (mp, np_) != (m, n):
        out = out[:m, :n]
    return out


# ----------------------------- rmsnorm (+fused residual add) -----------------
def _rmsnorm_kernel(x_ref, r_ref, w_ref, o_ref, *, eps, add_residual):
    x = x_ref[0].astype(jnp.float32)
    if add_residual:
        x = x + r_ref[0].astype(jnp.float32)
    ms = jnp.mean(x * x, axis=-1, keepdims=True)
    o_ref[0] = (x * lax.rsqrt(ms + eps)
                * w_ref[...].astype(jnp.float32)).astype(o_ref.dtype)


def rmsnorm(x, residual, weight, *, eps=1e-5, add_residual=True):
    b, l, d = x.shape
    lt = _pick_chunk(l, 256)
    kern = functools.partial(_rmsnorm_kernel, eps=eps, add_residual=add_residual)
    return pl.pallas_call(
        kern,
        grid=(b, l // lt),
        in_specs=[pl.BlockSpec((1, lt, d), lambda i, j: (i, j, 0)),
                  pl.BlockSpec((1, lt, d), lambda i, j: (i, j, 0)),
                  pl.BlockSpec((1, d), lambda i, j: (0, 0))],
        out_shape=jax.ShapeDtypeStruct((b, l, d), x.dtype),
        out_specs=pl.BlockSpec((1, lt, d), lambda i, j: (i, j, 0)),
        compiler_params=pltpu.CompilerParams(
            dimension_semantics=("parallel", "parallel")),
    )(x, residual, weight)


# ----------------------------- full forward ----------------------------------
def mamba_forward(input_ids, params, cfg: Config):
    emb = params["embedding"]                       # (vocab, d_model) bf16
    x = emb[input_ids]                              # plain-JAX gather (glue)
    if cfg.normalize_embeddings:
        xf = x.astype(jnp.float32)                  # F.normalize default dim=1
        x = (1e-4 * xf / jnp.maximum(
            jnp.linalg.norm(xf, axis=1, keepdims=True), 1e-12)).astype(emb.dtype)
    all_hidden_states = [x]

    no_skip_layer = (cfg.layer_name == "Residual Block No Skip")
    for lp in params["layers"]:
        mixed = mamba_block(x, lp, cfg)
        x = rmsnorm(mixed, x, lp["norm_w"], add_residual=not no_skip_layer)
        all_hidden_states.append(x)

    x = rmsnorm(x, x, params["norm_f_w"], add_residual=False)
    all_hidden_states.append(x)

    b, l, d_model = x.shape
    logits = pallas_matmul(x.reshape(b * l, d_model), params["lm_head_T"],
                           out_dtype=jnp.float32)
    return logits.reshape(b, l, -1), all_hidden_states


# ----------------------------- params ---------------------------------------
def init_params(key, cfg: Config):
    d_model, d_inner, nn = cfg.d_model, cfg.d_inner, cfg.d_state
    dt_rank, d_conv, vocab = cfg.dt_rank, cfg.d_conv, cfg.vocab_size
    r = dt_rank + 2 * nn
    r_pad = _round_up(r, 128)                       # lane-aligned x_proj width

    def uniform(k, shape, bound, dtype=jnp.float32):
        return jax.random.uniform(k, shape, jnp.float32, -bound, bound).astype(dtype)

    k_emb = jax.random.fold_in(key, 1000)
    emb = (0.02 * jax.random.normal(k_emb, (vocab, d_model), jnp.float32)
           ).astype(COMPUTE_DTYPE)
    params = {"embedding": emb,
              "lm_head_T": emb.T}                   # tied weight, transposed once

    # A = -exp(A_log), hoisted out of the scan; stored transposed (n, d_inner)
    a_neg_t = -jnp.tile(jnp.arange(1, nn + 1, dtype=jnp.float32)[:, None],
                        (1, d_inner))

    layers = []
    for i in range(cfg.n_layer):
        ks = jax.random.split(jax.random.fold_in(key, i + 1), 7)
        w_x = uniform(ks[3], (d_inner, r), 1.0 / math.sqrt(d_inner))
        w_x = jnp.pad(w_x, ((0, 0), (0, r_pad - r))).astype(COMPUTE_DTYPE)
        layers.append({
            "W_in": uniform(ks[0], (d_model, 2 * d_inner),
                            1.0 / math.sqrt(d_model), COMPUTE_DTYPE),
            "W_conv": uniform(ks[1], (d_conv, d_inner), 1.0 / math.sqrt(d_conv)),
            "b_conv": uniform(ks[2], (1, d_inner), 1.0 / math.sqrt(d_conv)),
            "W_x": w_x,
            "W_dt": uniform(ks[4], (dt_rank, d_inner),
                            1.0 / math.sqrt(dt_rank), COMPUTE_DTYPE),
            "b_dt": uniform(ks[5], (1, d_inner), 1.0 / math.sqrt(dt_rank)),
            "A_neg": a_neg_t,
            "D": jnp.ones((1, d_inner), jnp.float32),
            "W_out": uniform(ks[6], (d_inner, d_model),
                             1.0 / math.sqrt(d_inner), COMPUTE_DTYPE),
            "norm_w": jnp.ones((1, d_model), jnp.float32),
        })
    params["layers"] = layers
    params["norm_f_w"] = jnp.ones((1, d_model), jnp.float32)
    return params


# ----------------------------- main ------------------------------------------
if __name__ == "__main__":
    cfg = Config(d_model=32, n_layer=2, vocab_size=32,
                 layer_name="Residual Block", skip="Gating",
                 remove_conv=False, skip_strength=1.0,
                 normalize_embeddings=False)
    key = jax.random.PRNGKey(0)
    params = init_params(key, cfg)

    b, l = 2, 8
    input_ids = jax.random.randint(jax.random.fold_in(key, 0), (b, l), 0,
                                   cfg.vocab_size, dtype=jnp.int32)

    fwd = jax.jit(functools.partial(mamba_forward, cfg=cfg))
    logits, hiddens = fwd(input_ids, params)
    jax.block_until_ready(logits)

    assert logits.shape == (b, l, cfg.vocab_size)
    assert len(hiddens) == cfg.n_layer + 2
    assert all(h.shape == (b, l, cfg.d_model) for h in hiddens)
    assert bool(jnp.all(jnp.isfinite(logits)))
    print("KERNEL_OK")
</pallas_src>

<mosaic_0001>
module attributes {stable_mosaic.version = 11 : i64} {
  func.func @_rmsnorm_kernel(%arg0: i32, %arg1: i32, %arg2: memref<1x8x32xbf16, #tpu.memory_space<vmem>>, %arg3: memref<1x8x32xbf16, #tpu.memory_space<vmem>>, %arg4: memref<1x32xf32, #tpu.memory_space<vmem>>, %arg5: memref<1x8x32xbf16, #tpu.memory_space<vmem>>) attributes {dimension_semantics = [#tpu.dimension_semantics<parallel>, #tpu.dimension_semantics<parallel>], iteration_bounds = array<i64: 2, 1>, scalar_prefetch = 0 : i64, scratch_operands = 0 : i64, tpu.core_type = #tpu.core_type<tc>, window_params = [{transform_indices = @transform_0, window_bounds = array<i64: 1, 8, 32>}, {transform_indices = @transform_1, window_bounds = array<i64: 1, 8, 32>}, {pipeline_mode = #tpu.pipeline_mode<synchronous>, transform_indices = @transform_2, window_bounds = array<i64: 1, 32>}, {transform_indices = @transform_3, window_bounds = array<i64: 1, 8, 32>}]} {
    %c0 = arith.constant 0 : index
    %c0_0 = arith.constant 0 : index
    %c0_1 = arith.constant 0 : index
    %0 = vector.load %arg2[%c0, %c0_0, %c0_1] : memref<1x8x32xbf16, #tpu.memory_space<vmem>>, vector<1x8x32xbf16>
    %1 = vector.shape_cast %0 : vector<1x8x32xbf16> to vector<8x32xbf16>
    %2 = arith.extf %1 : vector<8x32xbf16> to vector<8x32xf32>
    %3 = arith.mulf %2, %2 : vector<8x32xf32>
    %cst = arith.constant dense<0.000000e+00> : vector<8xf32>
    %4 = vector.multi_reduction <add>, %3, %cst [1] : vector<8x32xf32> to vector<8xf32>
    %5 = vector.shape_cast %4 : vector<8xf32> to vector<8x1xf32>
    %cst_2 = arith.constant 3.200000e+01 : f32
    %6 = vector.broadcast %cst_2 : f32 to vector<8x1xf32>
    %7 = arith.divf %5, %6 : vector<8x1xf32>
    %cst_3 = arith.constant 9.99999974E-6 : f32
    %8 = vector.broadcast %cst_3 : f32 to vector<8x1xf32>
    %9 = arith.addf %7, %8 : vector<8x1xf32>
    %10 = math.rsqrt %9 : vector<8x1xf32>
    %11 = vector.broadcast %10 : vector<8x1xf32> to vector<8x32xf32>
    %12 = arith.mulf %2, %11 : vector<8x32xf32>
    %c0_4 = arith.constant 0 : index
    %c0_5 = arith.constant 0 : index
    %13 = vector.load %arg4[%c0_4, %c0_5] : memref<1x32xf32, #tpu.memory_space<vmem>>, vector<1x32xf32>
    %14 = vector.broadcast %13 : vector<1x32xf32> to vector<8x32xf32>
    %15 = arith.mulf %12, %14 : vector<8x32xf32>
    %16 = arith.truncf %15 : vector<8x32xf32> to vector<8x32xbf16>
    %c0_6 = arith.constant 0 : index
    %c0_7 = arith.constant 0 : index
    %c0_8 = arith.constant 0 : index
    %17 = vector.load %arg5[%c0_6, %c0_7, %c0_8] : memref<1x8x32xbf16, #tpu.memory_space<vmem>>, vector<1x8x32xbf16>
    %18 = vector.shape_cast %17 : vector<1x8x32xbf16> to vector<8x32xbf16>
    %19 = vector.shape_cast %16 : vector<8x32xbf16> to vector<1x8x32xbf16>
    tpu.vector_store %arg5[%c0_6, %c0_7, %c0_8], %19 {strides = array<i32>} : memref<1x8x32xbf16, #tpu.memory_space<vmem>>, vector<1x8x32xbf16>,
    return
  }
  func.func @transform_0(%arg0: i32, %arg1: i32) -> (i32, i32, i32) {
    %c0_i32 = arith.constant 0 : i32
    %c0_i32_0 = arith.constant 0 : i32
    return %arg0, %arg1, %c0_i32 : i32, i32, i32
  }
  func.func @transform_1(%arg0: i32, %arg1: i32) -> (i32, i32, i32) {
    %c0_i32 = arith.constant 0 : i32
    %c0_i32_0 = arith.constant 0 : i32
    return %arg0, %arg1, %c0_i32 : i32, i32, i32
  }
  func.func @transform_2(%arg0: i32, %arg1: i32) -> (i32, i32) {
    %c0_i32 = arith.constant 0 : i32
    %c0_i32_0 = arith.constant 0 : i32
    %c0_i32_1 = arith.constant 0 : i32
    return %c0_i32, %c0_i32_0 : i32, i32
  }
  func.func @transform_3(%arg0: i32, %arg1: i32) -> (i32, i32, i32) {
    %c0_i32 = arith.constant 0 : i32
    %c0_i32_0 = arith.constant 0 : i32
    return %arg0, %arg1, %c0_i32 : i32, i32, i32
  }
}

module attributes {stable_mosaic.version = 11 : i64} {
  func.func @kernel(%arg0: i32, %arg1: i32, %arg2: memref<1x8x32xbf16, #tpu.memory_space<vmem>>, %arg3: memref<32x128xbf16, #tpu.memory_space<vmem>>, %arg4: memref<4x64xf32, #tpu.memory_space<vmem>>, %arg5: memref<1x64xf32, #tpu.memory_space<vmem>>, %arg6: memref<64x128xbf16, #tpu.memory_space<vmem>>, %arg7: memref<2x64xbf16, #tpu.memory_space<vmem>>, %arg8: memref<1x64xf32, #tpu.memory_space<vmem>>, %arg9: memref<16x64xf32, #tpu.memory_space<vmem>>, %arg10: memref<1x64xf32, #tpu.memory_space<vmem>>, %arg11: memref<1x8x64xbf16, #tpu.memory_space<vmem>>, %arg12: memref<8x64xf32, #tpu.memory_space<vmem>>, %arg13: memref<16x64xf32, #tpu.memory_space<vmem>>, %arg14: memref<8x64xf32, #tpu.memory_space<vmem>>, %arg15: memref<8x64xf32, #tpu.memory_space<vmem>>, %arg16: memref<8x64xf32, #tpu.memory_space<vmem>>, %arg17: memref<8x32xf32, #tpu.memory_space<vmem>>, %arg18: memref<8x16x64xf32, #tpu.memory_space<vmem>>, %arg19: memref<8x64xf32, #tpu.memory_space<vmem>>) attributes {dimension_semantics = [#tpu.dimension_semantics<parallel>, #tpu.dimension_semantics<arbitrary>], iteration_bounds = array<i64: 2, 1>, scalar_prefetch = 0 : i64, scratch_operands = 8 : i64, tpu.core_type = #tpu.core_type<tc>, window_params = [{transform_indices = @transform_0, window_bounds = array<i64: 1, 8, 32>}, {pipeline_mode = #tpu.pipeline_mode<synchronous>, transform_indices = @transform_1, window_bounds = array<i64: 32, 128>}, {pipeline_mode = #tpu.pipeline_mode<synchronous>, transform_indices = @transform_2, window_bounds = array<i64: 4, 64>}, {pipeline_mode = #tpu.pipeline_mode<synchronous>, transform_indices = @transform_3, window_bounds = array<i64: 1, 64>}, {pipeline_mode = #tpu.pipeline_mode<synchronous>, transform_indices = @transform_4, window_bounds = array<i64: 64, 128>}, {pipeline_mode = #tpu.pipeline_mode<synchronous>, transform_indices = @transform_5, window_bounds = array<i64: 2, 64>}, {pipeline_mode = #tpu.pipeline_mode<synchronous>, transform_indices = @transform_6, window_bounds = array<i64: 1, 64>}, {pipeline_mode = #tpu.pipeline_mode<synchronous>, transform_indices = @transform_7, window_bounds = array<i64: 16, 64>}, {pipeline_mode = #tpu.pipeline_mode<synchronous>, transform_indices = @transform_8, window_bounds = array<i64: 1, 64>}, {transform_indices = @transform_9, window_bounds = array<i64: 1, 8, 64>}]} {
    %c0_i32 = arith.constant 0 : i32
    %0 = arith.cmpi eq, %arg1, %c0_i32 : i32
    %1 = arith.extui %0 : i1 to i32
    %c0_i32_0 = arith.constant 0 : i32
    %2 = arith.cmpi ne, %1, %c0_i32_0 : i32
    scf.if %2 {
      %cst_163 = arith.constant 0.000000e+00 : f32
      %339 = vector.broadcast %cst_163 : f32 to vector<16x64xf32>
      %c0_164 = arith.constant 0 : index
      %c0_165 = arith.constant 0 : index
      %340 = vector.load %arg13[%c0_164, %c0_165] : memref<16x64xf32, #tpu.memory_space<vmem>>, vector<16x64xf32>
      tpu.vector_store %arg13[%c0_164, %c0_165], %339 {strides = array<i32>} : memref<16x64xf32, #tpu.memory_space<vmem>>, vector<16x64xf32>,
      %cst_166 = arith.constant 0.000000e+00 : f32
      %341 = vector.broadcast %cst_166 : f32 to vector<8x64xf32>
      %c0_167 = arith.constant 0 : index
      %c0_168 = arith.constant 0 : index
      %342 = vector.load %arg12[%c0_167, %c0_168] : memref<8x64xf32, #tpu.memory_space<vmem>>, vector<8x64xf32>
      tpu.vector_store %arg12[%c0_167, %c0_168], %341 {strides = array<i32>} : memref<8x64xf32, #tpu.memory_space<vmem>>, vector<8x64xf32>,
    } else {
    }
    %c0 = arith.constant 0 : index
    %c0_1 = arith.constant 0 : index
    %c0_2 = arith.constant 0 : index
    %3 = vector.load %arg2[%c0, %c0_1, %c0_2] : memref<1x8x32xbf16, #tpu.memory_space<vmem>>, vector<1x8x32xbf16>
    %4 = vector.shape_cast %3 : vector<1x8x32xbf16> to vector<8x32xbf16>
    %c0_3 = arith.constant 0 : index
    %c0_4 = arith.constant 0 : index
    %5 = vector.load %arg3[%c0_3, %c0_4] : memref<32x128xbf16, #tpu.memory_space<vmem>>, vector<32x128xbf16>
    %cst = arith.constant dense<0.000000e+00> : vector<8x128xf32>
    %6 = tpu.matmul %4, %5, %cst {dimension_numbers = #tpu.dot_dimension_numbers<[1], [0], [0], [1], [0, 0, 1, 1], [], []>} : vector<8x32xbf16>, vector<32x128xbf16>, vector<8x128xf32> -> vector<8x128xf32>
    %7 = vector.extract_strided_slice %6 {offsets = [0, 0], sizes = [8, 64], strides = [1, 1]} : vector<8x128xf32> to vector<8x64xf32>
    %8 = vector.extract_strided_slice %6 {offsets = [0, 64], sizes = [8, 64], strides = [1, 1]} : vector<8x128xf32> to vector<8x64xf32>
    %c0_5 = arith.constant 0 : index
    %c0_6 = arith.constant 0 : index
    %9 = vector.load %arg12[%c0_5, %c0_6] : memref<8x64xf32, #tpu.memory_space<vmem>>, vector<8x64xf32>
    %10 = tpu.concatenate %9, %7 in 0 : vector<8x64xf32>, vector<8x64xf32> -> vector<16x64xf32>
    %c0_7 = arith.constant 0 : index
    %c0_8 = arith.constant 0 : index
    %11 = vector.load %arg4[%c0_7, %c0_8] : memref<4x64xf32, #tpu.memory_space<vmem>>, vector<4x64xf32>
    %cst_9 = arith.constant 0.000000e+00 : f32
    %12 = vector.broadcast %cst_9 : f32 to vector<8x64xf32>
    %13 = vector.extract_strided_slice %10 {offsets = [5, 0], sizes = [8, 64], strides = [1, 1]} : vector<16x64xf32> to vector<8x64xf32>
    %14 = vector.extract_strided_slice %11 {offsets = [0, 0], sizes = [1, 64], strides = [1, 1]} : vector<4x64xf32> to vector<1x64xf32>
    %15 = vector.broadcast %14 : vector<1x64xf32> to vector<8x64xf32>
    %16 = arith.mulf %13, %15 : vector<8x64xf32>
    %17 = arith.addf %12, %16 : vector<8x64xf32>
    %18 = vector.extract_strided_slice %10 {offsets = [6, 0], sizes = [8, 64], strides = [1, 1]} : vector<16x64xf32> to vector<8x64xf32>
    %19 = vector.extract_strided_slice %11 {offsets = [1, 0], sizes = [1, 64], strides = [1, 1]} : vector<4x64xf32> to vector<1x64xf32>
    %20 = vector.broadcast %19 : vector<1x64xf32> to vector<8x64xf32>
    %21 = arith.mulf %18, %20 : vector<8x64xf32>
    %22 = arith.addf %17, %21 : vector<8x64xf32>
    %23 = vector.extract_strided_slice %10 {offsets = [7, 0], sizes = [8, 64], strides = [1, 1]} : vector<16x64xf32> to vector<8x64xf32>
    %24 = vector.extract_strided_slice %11 {offsets = [2, 0], sizes = [1, 64], strides = [1, 1]} : vector<4x64xf32> to vector<1x64xf32>
    %25 = vector.broadcast %24 : vector<1x64xf32> to vector<8x64xf32>
    %26 = arith.mulf %23, %25 : vector<8x64xf32>
    %27 = arith.addf %22, %26 : vector<8x64xf32>
    %28 = vector.extract_strided_slice %10 {offsets = [8, 0], sizes = [8, 64], strides = [1, 1]} : vector<16x64xf32> to vector<8x64xf32>
    %29 = vector.extract_strided_slice %11 {offsets = [3, 0], sizes = [1, 64], strides = [1, 1]} : vector<4x64xf32> to vector<1x64xf32>
    %30 = vector.broadcast %29 : vector<1x64xf32> to vector<8x64xf32>
    %31 = arith.mulf %28, %30 : vector<8x64xf32>
    %32 = arith.addf %27, %31 : vector<8x64xf32>
    %c0_10 = arith.constant 0 : index
    %c0_11 = arith.constant 0 : index
    %33 = vector.load %arg5[%c0_10, %c0_11] : memref<1x64xf32, #tpu.memory_space<vmem>>, vector<1x64xf32>
    %34 = vector.broadcast %33 : vector<1x64xf32> to vector<8x64xf32>
    %35 = arith.addf %32, %34 : vector<8x64xf32>
    %36 = arith.negf %35 : vector<8x64xf32>
    %37 = math.exp %36 : vector<8x64xf32>
    %cst_12 = arith.constant 1.000000e+00 : f32
    %38 = vector.broadcast %cst_12 : f32 to vector<8x64xf32>
    %39 = arith.addf %38, %37 : vector<8x64xf32>
    %40 = arith.divf %38, %39 : vector<8x64xf32>
    %41 = arith.mulf %35, %40 : vector<8x64xf32>
    %42 = vector.extract_strided_slice %10 {offsets = [8, 0], sizes = [8, 64], strides = [1, 1]} : vector<16x64xf32> to vector<8x64xf32>
    %c0_13 = arith.constant 0 : index
    %c0_14 = arith.constant 0 : index
    %43 = vector.load %arg12[%c0_13, %c0_14] : memref<8x64xf32, #tpu.memory_space<vmem>>, vector<8x64xf32>
    tpu.vector_store %arg12[%c0_13, %c0_14], %42 {strides = array<i32>} : memref<8x64xf32, #tpu.memory_space<vmem>>, vector<8x64xf32>,
    %44 = arith.truncf %41 : vector<8x64xf32> to vector<8x64xbf16>
    %c0_15 = arith.constant 0 : index
    %c0_16 = arith.constant 0 : index
    %45 = vector.load %arg6[%c0_15, %c0_16] : memref<64x128xbf16, #tpu.memory_space<vmem>>, vector<64x128xbf16>
    %cst_17 = arith.constant dense<0.000000e+00> : vector<8x128xf32>
    %46 = tpu.matmul %44, %45, %cst_17 {dimension_numbers = #tpu.dot_dimension_numbers<[1], [0], [0], [1], [0, 0, 1, 1], [], []>} : vector<8x64xbf16>, vector<64x128xbf16>, vector<8x128xf32> -> vector<8x128xf32>
    %47 = vector.extract_strided_slice %46 {offsets = [0, 0], sizes = [8, 2], strides = [1, 1]} : vector<8x128xf32> to vector<8x2xf32>
    %48 = arith.truncf %47 : vector<8x2xf32> to vector<8x2xbf16>
    %c0_18 = arith.constant 0 : index
    %c0_19 = arith.constant 0 : index
    %49 = vector.load %arg7[%c0_18, %c0_19] : memref<2x64xbf16, #tpu.memory_space<vmem>>, vector<2x64xbf16>
    %cst_20 = arith.constant dense<0.000000e+00> : vector<8x64xf32>
    %50 = tpu.matmul %48, %49, %cst_20 {dimension_numbers = #tpu.dot_dimension_numbers<[1], [0], [0], [1], [0, 0, 1, 1], [], []>} : vector<8x2xbf16>, vector<2x64xbf16>, vector<8x64xf32> -> vector<8x64xf32>
    %c0_21 = arith.constant 0 : index
    %c0_22 = arith.constant 0 : index
    %51 = vector.load %arg8[%c0_21, %c0_22] : memref<1x64xf32, #tpu.memory_space<vmem>>, vector<1x64xf32>
    %52 = vector.broadcast %51 : vector<1x64xf32> to vector<8x64xf32>
    %53 = arith.addf %50, %52 : vector<8x64xf32>
    %cst_23 = arith.constant 2.000000e+01 : f32
    %54 = vector.broadcast %cst_23 : f32 to vector<8x64xf32>
    %55 = arith.cmpf ogt, %53, %54 : vector<8x64xf32>
    %cst_24 = arith.constant 2.000000e+01 : f32
    %56 = vector.broadcast %cst_24 : f32 to vector<8x64xf32>
    %57 = arith.minimumf %53, %56 : vector<8x64xf32>
    %58 = math.exp %57 : vector<8x64xf32>
    %59 = math.log1p %58 : vector<8x64xf32>
    %60 = arith.select %55, %53, %59 : vector<8x64xi1>, vector<8x64xf32>
    %c0_25 = arith.constant 0 : index
    %c0_26 = arith.constant 0 : index
    %61 = vector.load %arg9[%c0_25, %c0_26] : memref<16x64xf32, #tpu.memory_space<vmem>>, vector<16x64xf32>
    %62 = vector.shape_cast %60 : vector<8x64xf32> to vector<8x1x64xf32>
    %63 = vector.shape_cast %61 : vector<16x64xf32> to vector<1x16x64xf32>
    %64 = vector.broadcast %62 : vector<8x1x64xf32> to vector<8x16x64xf32>
    %65 = vector.broadcast %63 : vector<1x16x64xf32> to vector<8x16x64xf32>
    %66 = arith.mulf %64, %65 : vector<8x16x64xf32>
    %67 = math.exp %66 : vector<8x16x64xf32>
    %c0_27 = arith.constant 0 : index
    %c0_28 = arith.constant 0 : index
    %c0_29 = arith.constant 0 : index
    %68 = vector.load %arg18[%c0_27, %c0_28, %c0_29] : memref<8x16x64xf32, #tpu.memory_space<vmem>>, vector<8x16x64xf32>
    tpu.vector_store %arg18[%c0_27, %c0_28, %c0_29], %67 {strides = array<i32>} : memref<8x16x64xf32, #tpu.memory_space<vmem>>, vector<8x16x64xf32>,
    %c0_30 = arith.constant 0 : index
    %c0_31 = arith.constant 0 : index
    %69 = vector.load %arg14[%c0_30, %c0_31] : memref<8x64xf32, #tpu.memory_space<vmem>>, vector<8x64xf32>
    tpu.vector_store %arg14[%c0_30, %c0_31], %41 {strides = array<i32>} : memref<8x64xf32, #tpu.memory_space<vmem>>, vector<8x64xf32>,
    %70 = arith.mulf %60, %41 : vector<8x64xf32>
    %c0_32 = arith.constant 0 : index
    %c0_33 = arith.constant 0 : index
    %71 = vector.load %arg15[%c0_32, %c0_33] : memref<8x64xf32, #tpu.memory_space<vmem>>, vector<8x64xf32>
    tpu.vector_store %arg15[%c0_32, %c0_33], %70 {strides = array<i32>} : memref<8x64xf32, #tpu.memory_space<vmem>>, vector<8x64xf32>,
    %72 = vector.extract_strided_slice %46 {offsets = [0, 2], sizes = [8, 32], strides = [1, 1]} : vector<8x128xf32> to vector<8x32xf32>
    %c0_34 = arith.constant 0 : index
    %c0_35 = arith.constant 0 : index
    %73 = vector.load %arg17[%c0_34, %c0_35] : memref<8x32xf32, #tpu.memory_space<vmem>>, vector<8x32xf32>
    tpu.vector_store %arg17[%c0_34, %c0_35], %72 {strides = array<i32>} : memref<8x32xf32, #tpu.memory_space<vmem>>, vector<8x32xf32>,
    %c0_36 = arith.constant 0 : index
    %c0_37 = arith.constant 0 : index
    %74 = vector.load %arg16[%c0_36, %c0_37] : memref<8x64xf32, #tpu.memory_space<vmem>>, vector<8x64xf32>
    tpu.vector_store %arg16[%c0_36, %c0_37], %8 {strides = array<i32>} : memref<8x64xf32, #tpu.memory_space<vmem>>, vector<8x64xf32>,
    %75 = tpu.iota {dimensions = array<i32: 0>} : vector<16x32xi32>
    %76 = tpu.iota {dimensions = array<i32: 1>} : vector<16x32xi32>
    %77 = arith.cmpi eq, %76, %75 : vector<16x32xi32>
    %c16_i32 = arith.constant 16 : i32
    %78 = vector.broadcast %c16_i32 : i32 to vector<16x32xi32>
    %79 = arith.addi %75, %78 : vector<16x32xi32>
    %80 = arith.cmpi eq, %76, %79 : vector<16x32xi32>
    %c0_i32_38 = arith.constant 0 : i32
    %81 = arith.index_cast %c0_i32_38 : i32 to index
    %c0_39 = arith.constant 0 : index
    %82 = vector.load %arg17[%81, %c0_39] : memref<8x32xf32, #tpu.memory_space<vmem>>, vector<1x32xf32>
    %83 = vector.shape_cast %82 : vector<1x32xf32> to vector<1x32xf32>
    %84 = vector.broadcast %83 : vector<1x32xf32> to vector<16x32xf32>
    %cst_40 = arith.constant 0.000000e+00 : f32
    %85 = vector.broadcast %cst_40 : f32 to vector<16x32xf32>
    %86 = arith.select %77, %84, %85 : vector<16x32xi1>, vector<16x32xf32>
    %cst_41 = arith.constant dense<0.000000e+00> : vector<16xf32>
    %87 = vector.multi_reduction <add>, %86, %cst_41 [1] : vector<16x32xf32> to vector<16xf32>
    %88 = vector.shape_cast %87 : vector<16xf32> to vector<16x1xf32>
    %cst_42 = arith.constant 0.000000e+00 : f32
    %89 = vector.broadcast %cst_42 : f32 to vector<16x32xf32>
    %90 = arith.select %80, %84, %89 : vector<16x32xi1>, vector<16x32xf32>
    %cst_43 = arith.constant dense<0.000000e+00> : vector<16xf32>
    %91 = vector.multi_reduction <add>, %90, %cst_43 [1] : vector<16x32xf32> to vector<16xf32>
    %92 = vector.shape_cast %91 : vector<16xf32> to vector<16x1xf32>
    %93 = arith.index_cast %c0_i32_38 : i32 to index
    %c0_44 = arith.constant 0 : index
    %c0_45 = arith.constant 0 : index
    %94 = vector.load %arg18[%93, %c0_44, %c0_45] : memref<8x16x64xf32, #tpu.memory_space<vmem>>, vector<1x16x64xf32>
    %95 = vector.shape_cast %94 : vector<1x16x64xf32> to vector<16x64xf32>
    %c0_46 = arith.constant 0 : index
    %c0_47 = arith.constant 0 : index
    %96 = vector.load %arg13[%c0_46, %c0_47] : memref<16x64xf32, #tpu.memory_space<vmem>>, vector<16x64xf32>
    %97 = arith.mulf %95, %96 : vector<16x64xf32>
    %98 = arith.index_cast %c0_i32_38 : i32 to index
    %c0_48 = arith.constant 0 : index
    %99 = vector.load %arg15[%98, %c0_48] : memref<8x64xf32, #tpu.memory_space<vmem>>, vector<1x64xf32>
    %100 = vector.broadcast %88 : vector<16x1xf32> to vector<16x64xf32>
    %101 = vector.broadcast %99 : vector<1x64xf32> to vector<16x64xf32>
    %102 = arith.mulf %100, %101 : vector<16x64xf32>
    %103 = arith.addf %97, %102 : vector<16x64xf32>
    %c0_49 = arith.constant 0 : index
    %c0_50 = arith.constant 0 : index
    %104 = vector.load %arg13[%c0_49, %c0_50] : memref<16x64xf32, #tpu.memory_space<vmem>>, vector<16x64xf32>
    tpu.vector_store %arg13[%c0_49, %c0_50], %103 {strides = array<i32>} : memref<16x64xf32, #tpu.memory_space<vmem>>, vector<16x64xf32>,
    %105 = vector.broadcast %92 : vector<16x1xf32> to vector<16x64xf32>
    %106 = arith.mulf %103, %105 : vector<16x64xf32>
    %cst_51 = arith.constant dense<0.000000e+00> : vector<64xf32>
    %107 = vector.multi_reduction <add>, %106, %cst_51 [0] : vector<16x64xf32> to vector<64xf32>
    %108 = vector.shape_cast %107 : vector<64xf32> to vector<1x64xf32>
    %109 = arith.index_cast %c0_i32_38 : i32 to index
    %c0_52 = arith.constant 0 : index
    %110 = vector.load %arg19[%109, %c0_52] : memref<8x64xf32, #tpu.memory_space<vmem>>, vector<1x64xf32>
    tpu.vector_store %arg19[%109, %c0_52], %108 {strides = array<i32>} : memref<8x64xf32, #tpu.memory_space<vmem>>, vector<1x64xf32>,
    %c1_i32 = arith.constant 1 : i32
    %111 = arith.index_cast %c1_i32 : i32 to index
    %c0_53 = arith.constant 0 : index
    %112 = vector.load %arg17[%111, %c0_53] : memref<8x32xf32, #tpu.memory_space<vmem>>, vector<1x32xf32>
    %113 = vector.shape_cast %112 : vector<1x32xf32> to vector<1x32xf32>
    %114 = vector.broadcast %113 : vector<1x32xf32> to vector<16x32xf32>
    %cst_54 = arith.constant 0.000000e+00 : f32
    %115 = vector.broadcast %cst_54 : f32 to vector<16x32xf32>
    %116 = arith.select %77, %114, %115 : vector<16x32xi1>, vector<16x32xf32>
    %cst_55 = arith.constant dense<0.000000e+00> : vector<16xf32>
    %117 = vector.multi_reduction <add>, %116, %cst_55 [1] : vector<16x32xf32> to vector<16xf32>
    %118 = vector.shape_cast %117 : vector<16xf32> to vector<16x1xf32>
    %cst_56 = arith.constant 0.000000e+00 : f32
    %119 = vector.broadcast %cst_56 : f32 to vector<16x32xf32>
    %120 = arith.select %80, %114, %119 : vector<16x32xi1>, vector<16x32xf32>
    %cst_57 = arith.constant dense<0.000000e+00> : vector<16xf32>
    %121 = vector.multi_reduction <add>, %120, %cst_57 [1] : vector<16x32xf32> to vector<16xf32>
    %122 = vector.shape_cast %121 : vector<16xf32> to vector<16x1xf32>
    %123 = arith.index_cast %c1_i32 : i32 to index
    %c0_58 = arith.constant 0 : index
    %c0_59 = arith.constant 0 : index
    %124 = vector.load %arg18[%123, %c0_58, %c0_59] : memref<8x16x64xf32, #tpu.memory_space<vmem>>, vector<1x16x64xf32>
    %125 = vector.shape_cast %124 : vector<1x16x64xf32> to vector<16x64xf32>
    %c0_60 = arith.constant 0 : index
    %c0_61 = arith.constant 0 : index
    %126 = vector.load %arg13[%c0_60, %c0_61] : memref<16x64xf32, #tpu.memory_space<vmem>>, vector<16x64xf32>
    %127 = arith.mulf %125, %126 : vector<16x64xf32>
    %128 = arith.index_cast %c1_i32 : i32 to index
    %c0_62 = arith.constant 0 : index
    %129 = vector.load %arg15[%128, %c0_62] : memref<8x64xf32, #tpu.memory_space<vmem>>, vector<1x64xf32>
    %130 = vector.broadcast %118 : vector<16x1xf32> to vector<16x64xf32>
    %131 = vector.broadcast %129 : vector<1x64xf32> to vector<16x64xf32>
    %132 = arith.mulf %130, %131 : vector<16x64xf32>
    %133 = arith.addf %127, %132 : vector<16x64xf32>
    %c0_63 = arith.constant 0 : index
    %c0_64 = arith.constant 0 : index
    %134 = vector.load %arg13[%c0_63, %c0_64] : memref<16x64xf32, #tpu.memory_space<vmem>>, vector<16x64xf32>
    tpu.vector_store %arg13[%c0_63, %c0_64], %133 {strides = array<i32>} : memref<16x64xf32, #tpu.memory_space<vmem>>, vector<16x64xf32>,
    %135 = vector.broadcast %122 : vector<16x1xf32> to vector<16x64xf32>
    %136 = arith.mulf %133, %135 : vector<16x64xf32>
    %cst_65 = arith.constant dense<0.000000e+00> : vector<64xf32>
    %137 = vector.multi_reduction <add>, %136, %cst_65 [0] : vector<16x64xf32> to vector<64xf32>
    %138 = vector.shape_cast %137 : vector<64xf32> to vector<1x64xf32>
    %139 = arith.index_cast %c1_i32 : i32 to index
    %c0_66 = arith.constant 0 : index
    %140 = vector.load %arg19[%139, %c0_66] : memref<8x64xf32, #tpu.memory_space<vmem>>, vector<1x64xf32>
    tpu.vector_store %arg19[%139, %c0_66], %138 {strides = array<i32>} : memref<8x64xf32, #tpu.memory_space<vmem>>, vector<1x64xf32>,
    %c2_i32 = arith.constant 2 : i32
    %141 = arith.index_cast %c2_i32 : i32 to index
    %c0_67 = arith.constant 0 : index
    %142 = vector.load %arg17[%141, %c0_67] : memref<8x32xf32, #tpu.memory_space<vmem>>, vector<1x32xf32>
    %143 = vector.shape_cast %142 : vector<1x32xf32> to vector<1x32xf32>
    %144 = vector.broadcast %143 : vector<1x32xf32> to vector<16x32xf32>
    %cst_68 = arith.constant 0.000000e+00 : f32
    %145 = vector.broadcast %cst_68 : f32 to vector<16x32xf32>
    %146 = arith.select %77, %144, %145 : vector<16x32xi1>, vector<16x32xf32>
    %cst_69 = arith.constant dense<0.000000e+00> : vector<16xf32>
    %147 = vector.multi_reduction <add>, %146, %cst_69 [1] : vector<16x32xf32> to vector<16xf32>
    %148 = vector.shape_cast %147 : vector<16xf32> to vector<16x1xf32>
    %cst_70 = arith.constant 0.000000e+00 : f32
    %149 = vector.broadcast %cst_70 : f32 to vector<16x32xf32>
    %150 = arith.select %80, %144, %149 : vector<16x32xi1>, vector<16x32xf32>
    %cst_71 = arith.constant dense<0.000000e+00> : vector<16xf32>
    %151 = vector.multi_reduction <add>, %150, %cst_71 [1] : vector<16x32xf32> to vector<16xf32>
    %152 = vector.shape_cast %151 : vector<16xf32> to vector<16x1xf32>
    %153 = arith.index_cast %c2_i32 : i32 to index
    %c0_72 = arith.constant 0 : index
    %c0_73 = arith.constant 0 : index
    %154 = vector.load %arg18[%153, %c0_72, %c0_73] : memref<8x16x64xf32, #tpu.memory_space<vmem>>, vector<1x16x64xf32>
    %155 = vector.shape_cast %154 : vector<1x16x64xf32> to vector<16x64xf32>
    %c0_74 = arith.constant 0 : index
    %c0_75 = arith.constant 0 : index
    %156 = vector.load %arg13[%c0_74, %c0_75] : memref<16x64xf32, #tpu.memory_space<vmem>>, vector<16x64xf32>
    %157 = arith.mulf %155, %156 : vector<16x64xf32>
    %158 = arith.index_cast %c2_i32 : i32 to index
    %c0_76 = arith.constant 0 : index
    %159 = vector.load %arg15[%158, %c0_76] : memref<8x64xf32, #tpu.memory_space<vmem>>, vector<1x64xf32>
    %160 = vector.broadcast %148 : vector<16x1xf32> to vector<16x64xf32>
    %161 = vector.broadcast %159 : vector<1x64xf32> to vector<16x64xf32>
    %162 = arith.mulf %160, %161 : vector<16x64xf32>
    %163 = arith.addf %157, %162 : vector<16x64xf32>
    %c0_77 = arith.constant 0 : index
    %c0_78 = arith.constant 0 : index
    %164 = vector.load %arg13[%c0_77, %c0_78] : memref<16x64xf32, #tpu.memory_space<vmem>>, vector<16x64xf32>
    tpu.vector_store %arg13[%c0_77, %c0_78], %163 {strides = array<i32>} : memref<16x64xf32, #tpu.memory_space<vmem>>, vector<16x64xf32>,
    %165 = vector.broadcast %152 : vector<16x1xf32> to vector<16x64xf32>
    %166 = arith.mulf %163, %165 : vector<16x64xf32>
    %cst_79 = arith.constant dense<0.000000e+00> : vector<64xf32>
    %167 = vector.multi_reduction <add>, %166, %cst_79 [0] : vector<16x64xf32> to vector<64xf32>
    %168 = vector.shape_cast %167 : vector<64xf32> to vector<1x64xf32>
    %169 = arith.index_cast %c2_i32 : i32 to index
    %c0_80 = arith.constant 0 : index
    %170 = vector.load %arg19[%169, %c0_80] : memref<8x64xf32, #tpu.memory_space<vmem>>, vector<1x64xf32>
    tpu.vector_store %arg19[%169, %c0_80], %168 {strides = array<i32>} : memref<8x64xf32, #tpu.memory_space<vmem>>, vector<1x64xf32>,
    %c3_i32 = arith.constant 3 : i32
    %171 = arith.index_cast %c3_i32 : i32 to index
    %c0_81 = arith.constant 0 : index
    %172 = vector.load %arg17[%171, %c0_81] : memref<8x32xf32, #tpu.memory_space<vmem>>, vector<1x32xf32>
    %173 = vector.shape_cast %172 : vector<1x32xf32> to vector<1x32xf32>
    %174 = vector.broadcast %173 : vector<1x32xf32> to vector<16x32xf32>
    %cst_82 = arith.constant 0.000000e+00 : f32
    %175 = vector.broadcast %cst_82 : f32 to vector<16x32xf32>
    %176 = arith.select %77, %174, %175 : vector<16x32xi1>, vector<16x32xf32>
    %cst_83 = arith.constant dense<0.000000e+00> : vector<16xf32>
    %177 = vector.multi_reduction <add>, %176, %cst_83 [1] : vector<16x32xf32> to vector<16xf32>
    %178 = vector.shape_cast %177 : vector<16xf32> to vector<16x1xf32>
    %cst_84 = arith.constant 0.000000e+00 : f32
    %179 = vector.broadcast %cst_84 : f32 to vector<16x32xf32>
    %180 = arith.select %80, %174, %179 : vector<16x32xi1>, vector<16x32xf32>
    %cst_85 = arith.constant dense<0.000000e+00> : vector<16xf32>
    %181 = vector.multi_reduction <add>, %180, %cst_85 [1] : vector<16x32xf32> to vector<16xf32>
    %182 = vector.shape_cast %181 : vector<16xf32> to vector<16x1xf32>
    %183 = arith.index_cast %c3_i32 : i32 to index
    %c0_86 = arith.constant 0 : index
    %c0_87 = arith.constant 0 : index
    %184 = vector.load %arg18[%183, %c0_86, %c0_87] : memref<8x16x64xf32, #tpu.memory_space<vmem>>, vector<1x16x64xf32>
    %185 = vector.shape_cast %184 : vector<1x16x64xf32> to vector<16x64xf32>
    %c0_88 = arith.constant 0 : index
    %c0_89 = arith.constant 0 : index
    %186 = vector.load %arg13[%c0_88, %c0_89] : memref<16x64xf32, #tpu.memory_space<vmem>>, vector<16x64xf32>
    %187 = arith.mulf %185, %186 : vector<16x64xf32>
    %188 = arith.index_cast %c3_i32 : i32 to index
    %c0_90 = arith.constant 0 : index
    %189 = vector.load %arg15[%188, %c0_90] : memref<8x64xf32, #tpu.memory_space<vmem>>, vector<1x64xf32>
    %190 = vector.broadcast %178 : vector<16x1xf32> to vector<16x64xf32>
    %191 = vector.broadcast %189 : vector<1x64xf32> to vector<16x64xf32>
    %192 = arith.mulf %190, %191 : vector<16x64xf32>
    %193 = arith.addf %187, %192 : vector<16x64xf32>
    %c0_91 = arith.constant 0 : index
    %c0_92 = arith.constant 0 : index
    %194 = vector.load %arg13[%c0_91, %c0_92] : memref<16x64xf32, #tpu.memory_space<vmem>>, vector<16x64xf32>
    tpu.vector_store %arg13[%c0_91, %c0_92], %193 {strides = array<i32>} : memref<16x64xf32, #tpu.memory_space<vmem>>, vector<16x64xf32>,
    %195 = vector.broadcast %182 : vector<16x1xf32> to vector<16x64xf32>
    %196 = arith.mulf %193, %195 : vector<16x64xf32>
    %cst_93 = arith.constant dense<0.000000e+00> : vector<64xf32>
    %197 = vector.multi_reduction <add>, %196, %cst_93 [0] : vector<16x64xf32> to vector<64xf32>
    %198 = vector.shape_cast %197 : vector<64xf32> to vector<1x64xf32>
    %199 = arith.index_cast %c3_i32 : i32 to index
    %c0_94 = arith.constant 0 : index
    %200 = vector.load %arg19[%199, %c0_94] : memref<8x64xf32, #tpu.memory_space<vmem>>, vector<1x64xf32>
    tpu.vector_store %arg19[%199, %c0_94], %198 {strides = array<i32>} : memref<8x64xf32, #tpu.memory_space<vmem>>, vector<1x64xf32>,
    %c4_i32 = arith.constant 4 : i32
    %201 = arith.index_cast %c4_i32 : i32 to index
    %c0_95 = arith.constant 0 : index
    %202 = vector.load %arg17[%201, %c0_95] : memref<8x32xf32, #tpu.memory_space<vmem>>, vector<1x32xf32>
    %203 = vector.shape_cast %202 : vector<1x32xf32> to vector<1x32xf32>
    %204 = vector.broadcast %203 : vector<1x32xf32> to vector<16x32xf32>
    %cst_96 = arith.constant 0.000000e+00 : f32
    %205 = vector.broadcast %cst_96 : f32 to vector<16x32xf32>
    %206 = arith.select %77, %204, %205 : vector<16x32xi1>, vector<16x32xf32>
    %cst_97 = arith.constant dense<0.000000e+00> : vector<16xf32>
    %207 = vector.multi_reduction <add>, %206, %cst_97 [1] : vector<16x32xf32> to vector<16xf32>
    %208 = vector.shape_cast %207 : vector<16xf32> to vector<16x1xf32>
    %cst_98 = arith.constant 0.000000e+00 : f32
    %209 = vector.broadcast %cst_98 : f32 to vector<16x32xf32>
    %210 = arith.select %80, %204, %209 : vector<16x32xi1>, vector<16x32xf32>
    %cst_99 = arith.constant dense<0.000000e+00> : vector<16xf32>
    %211 = vector.multi_reduction <add>, %210, %cst_99 [1] : vector<16x32xf32> to vector<16xf32>
    %212 = vector.shape_cast %211 : vector<16xf32> to vector<16x1xf32>
    %213 = arith.index_cast %c4_i32 : i32 to index
    %c0_100 = arith.constant 0 : index
    %c0_101 = arith.constant 0 : index
    %214 = vector.load %arg18[%213, %c0_100, %c0_101] : memref<8x16x64xf32, #tpu.memory_space<vmem>>, vector<1x16x64xf32>
    %215 = vector.shape_cast %214 : vector<1x16x64xf32> to vector<16x64xf32>
    %c0_102 = arith.constant 0 : index
    %c0_103 = arith.constant 0 : index
    %216 = vector.load %arg13[%c0_102, %c0_103] : memref<16x64xf32, #tpu.memory_space<vmem>>, vector<16x64xf32>
    %217 = arith.mulf %215, %216 : vector<16x64xf32>
    %218 = arith.index_cast %c4_i32 : i32 to index
    %c0_104 = arith.constant 0 : index
    %219 = vector.load %arg15[%218, %c0_104] : memref<8x64xf32, #tpu.memory_space<vmem>>, vector<1x64xf32>
    %220 = vector.broadcast %208 : vector<16x1xf32> to vector<16x64xf32>
    %221 = vector.broadcast %219 : vector<1x64xf32> to vector<16x64xf32>
    %222 = arith.mulf %220, %221 : vector<16x64xf32>
    %223 = arith.addf %217, %222 : vector<16x64xf32>
    %c0_105 = arith.constant 0 : index
    %c0_106 = arith.constant 0 : index
    %224 = vector.load %arg13[%c0_105, %c0_106] : memref<16x64xf32, #tpu.memory_space<vmem>>, vector<16x64xf32>
    tpu.vector_store %arg13[%c0_105, %c0_106], %223 {strides = array<i32>} : memref<16x64xf32, #tpu.memory_space<vmem>>, vector<16x64xf32>,
    %225 = vector.broadcast %212 : vector<16x1xf32> to vector<16x64xf32>
    %226 = arith.mulf %223, %225 : vector<16x64xf32>
    %cst_107 = arith.constant dense<0.000000e+00> : vector<64xf32>
    %227 = vector.multi_reduction <add>, %226, %cst_107 [0] : vector<16x64xf32> to vector<64xf32>
    %228 = vector.shape_cast %227 : vector<64xf32> to vector<1x64xf32>
    %229 = arith.index_cast %c4_i32 : i32 to index
    %c0_108 = arith.constant 0 : index
    %230 = vector.load %arg19[%229, %c0_108] : memref<8x64xf32, #tpu.memory_space<vmem>>, vector<1x64xf32>
    tpu.vector_store %arg19[%229, %c0_108], %228 {strides = array<i32>} : memref<8x64xf32, #tpu.memory_space<vmem>>, vector<1x64xf32>,
    %c5_i32 = arith.constant 5 : i32
    %231 = arith.index_cast %c5_i32 : i32 to index
    %c0_109 = arith.constant 0 : index
    %232 = vector.load %arg17[%231, %c0_109] : memref<8x32xf32, #tpu.memory_space<vmem>>, vector<1x32xf32>
    %233 = vector.shape_cast %232 : vector<1x32xf32> to vector<1x32xf32>
    %234 = vector.broadcast %233 : vector<1x32xf32> to vector<16x32xf32>
    %cst_110 = arith.constant 0.000000e+00 : f32
    %235 = vector.broadcast %cst_110 : f32 to vector<16x32xf32>
    %236 = arith.select %77, %234, %235 : vector<16x32xi1>, vector<16x32xf32>
    %cst_111 = arith.constant dense<0.000000e+00> : vector<16xf32>
    %237 = vector.multi_reduction <add>, %236, %cst_111 [1] : vector<16x32xf32> to vector<16xf32>
    %238 = vector.shape_cast %237 : vector<16xf32> to vector<16x1xf32>
    %cst_112 = arith.constant 0.000000e+00 : f32
    %239 = vector.broadcast %cst_112 : f32 to vector<16x32xf32>
    %240 = arith.select %80, %234, %239 : vector<16x32xi1>, vector<16x32xf32>
    %cst_113 = arith.constant dense<0.000000e+00> : vector<16xf32>
    %241 = vector.multi_reduction <add>, %240, %cst_113 [1] : vector<16x32xf32> to vector<16xf32>
    %242 = vector.shape_cast %241 : vector<16xf32> to vector<16x1xf32>
    %243 = arith.index_cast %c5_i32 : i32 to index
    %c0_114 = arith.constant 0 : index
    %c0_115 = arith.constant 0 : index
    %244 = vector.load %arg18[%243, %c0_114, %c0_115] : memref<8x16x64xf32, #tpu.memory_space<vmem>>, vector<1x16x64xf32>
    %245 = vector.shape_cast %244 : vector<1x16x64xf32> to vector<16x64xf32>
    %c0_116 = arith.constant 0 : index
    %c0_117 = arith.constant 0 : index
    %246 = vector.load %arg13[%c0_116, %c0_117] : memref<16x64xf32, #tpu.memory_space<vmem>>, vector<16x64xf32>
    %247 = arith.mulf %245, %246 : vector<16x64xf32>
    %248 = arith.index_cast %c5_i32 : i32 to index
    %c0_118 = arith.constant 0 : index
    %249 = vector.load %arg15[%248, %c0_118] : memref<8x64xf32, #tpu.memory_space<vmem>>, vector<1x64xf32>
    %250 = vector.broadcast %238 : vector<16x1xf32> to vector<16x64xf32>
    %251 = vector.broadcast %249 : vector<1x64xf32> to vector<16x64xf32>
    %252 = arith.mulf %250, %251 : vector<16x64xf32>
    %253 = arith.addf %247, %252 : vector<16x64xf32>
    %c0_119 = arith.constant 0 : index
    %c0_120 = arith.constant 0 : index
    %254 = vector.load %arg13[%c0_119, %c0_120] : memref<16x64xf32, #tpu.memory_space<vmem>>, vector<16x64xf32>
    tpu.vector_store %arg13[%c0_119, %c0_120], %253 {strides = array<i32>} : memref<16x64xf32, #tpu.memory_space<vmem>>, vector<16x64xf32>,
    %255 = vector.broadcast %242 : vector<16x1xf32> to vector<16x64xf32>
    %256 = arith.mulf %253, %255 : vector<16x64xf32>
    %cst_121 = arith.constant dense<0.000000e+00> : vector<64xf32>
    %257 = vector.multi_reduction <add>, %256, %cst_121 [0] : vector<16x64xf32> to vector<64xf32>
    %258 = vector.shape_cast %257 : vector<64xf32> to vector<1x64xf32>
    %259 = arith.index_cast %c5_i32 : i32 to index
    %c0_122 = arith.constant 0 : index
    %260 = vector.load %arg19[%259, %c0_122] : memref<8x64xf32, #tpu.memory_space<vmem>>, vector<1x64xf32>
    tpu.vector_store %arg19[%259, %c0_122], %258 {strides = array<i32>} : memref<8x64xf32, #tpu.memory_space<vmem>>, vector<1x64xf32>,
    %c6_i32 = arith.constant 6 : i32
    %261 = arith.index_cast %c6_i32 : i32 to index
    %c0_123 = arith.constant 0 : index
    %262 = vector.load %arg17[%261, %c0_123] : memref<8x32xf32, #tpu.memory_space<vmem>>, vector<1x32xf32>
    %263 = vector.shape_cast %262 : vector<1x32xf32> to vector<1x32xf32>
    %264 = vector.broadcast %263 : vector<1x32xf32> to vector<16x32xf32>
    %cst_124 = arith.constant 0.000000e+00 : f32
    %265 = vector.broadcast %cst_124 : f32 to vector<16x32xf32>
    %266 = arith.select %77, %264, %265 : vector<16x32xi1>, vector<16x32xf32>
    %cst_125 = arith.constant dense<0.000000e+00> : vector<16xf32>
    %267 = vector.multi_reduction <add>, %266, %cst_125 [1] : vector<16x32xf32> to vector<16xf32>
    %268 = vector.shape_cast %267 : vector<16xf32> to vector<16x1xf32>
    %cst_126 = arith.constant 0.000000e+00 : f32
    %269 = vector.broadcast %cst_126 : f32 to vector<16x32xf32>
    %270 = arith.select %80, %264, %269 : vector<16x32xi1>, vector<16x32xf32>
    %cst_127 = arith.constant dense<0.000000e+00> : vector<16xf32>
    %271 = vector.multi_reduction <add>, %270, %cst_127 [1] : vector<16x32xf32> to vector<16xf32>
    %272 = vector.shape_cast %271 : vector<16xf32> to vector<16x1xf32>
    %273 = arith.index_cast %c6_i32 : i32 to index
    %c0_128 = arith.constant 0 : index
    %c0_129 = arith.constant 0 : index
    %274 = vector.load %arg18[%273, %c0_128, %c0_129] : memref<8x16x64xf32, #tpu.memory_space<vmem>>, vector<1x16x64xf32>
    %275 = vector.shape_cast %274 : vector<1x16x64xf32> to vector<16x64xf32>
    %c0_130 = arith.constant 0 : index
    %c0_131 = arith.constant 0 : index
    %276 = vector.load %arg13[%c0_130, %c0_131] : memref<16x64xf32, #tpu.memory_space<vmem>>, vector<16x64xf32>
    %277 = arith.mulf %275, %276 : vector<16x64xf32>
    %278 = arith.index_cast %c6_i32 : i32 to index
    %c0_132 = arith.constant 0 : index
    %279 = vector.load %arg15[%278, %c0_132] : memref<8x64xf32, #tpu.memory_space<vmem>>, vector<1x64xf32>
    %280 = vector.broadcast %268 : vector<16x1xf32> to vector<16x64xf32>
    %281 = vector.broadcast %279 : vector<1x64xf32> to vector<16x64xf32>
    %282 = arith.mulf %280, %281 : vector<16x64xf32>
    %283 = arith.addf %277, %282 : vector<16x64xf32>
    %c0_133 = arith.constant 0 : index
    %c0_134 = arith.constant 0 : index
    %284 = vector.load %arg13[%c0_133, %c0_134] : memref<16x64xf32, #tpu.memory_space<vmem>>, vector<16x64xf32>
    tpu.vector_store %arg13[%c0_133, %c0_134], %283 {strides = array<i32>} : memref<16x64xf32, #tpu.memory_space<vmem>>, vector<16x64xf32>,
    %285 = vector.broadcast %272 : vector<16x1xf32> to vector<16x64xf32>
    %286 = arith.mulf %283, %285 : vector<16x64xf32>
    %cst_135 = arith.constant dense<0.000000e+00> : vector<64xf32>
    %287 = vector.multi_reduction <add>, %286, %cst_135 [0] : vector<16x64xf32> to vector<64xf32>
    %288 = vector.shape_cast %287 : vector<64xf32> to vector<1x64xf32>
    %289 = arith.index_cast %c6_i32 : i32 to index
    %c0_136 = arith.constant 0 : index
    %290 = vector.load %arg19[%289, %c0_136] : memref<8x64xf32, #tpu.memory_space<vmem>>, vector<1x64xf32>
    tpu.vector_store %arg19[%289, %c0_136], %288 {strides = array<i32>} : memref<8x64xf32, #tpu.memory_space<vmem>>, vector<1x64xf32>,
    %c7_i32 = arith.constant 7 : i32
    %291 = arith.index_cast %c7_i32 : i32 to index
    %c0_137 = arith.constant 0 : index
    %292 = vector.load %arg17[%291, %c0_137] : memref<8x32xf32, #tpu.memory_space<vmem>>, vector<1x32xf32>
    %293 = vector.shape_cast %292 : vector<1x32xf32> to vector<1x32xf32>
    %294 = vector.broadcast %293 : vector<1x32xf32> to vector<16x32xf32>
    %cst_138 = arith.constant 0.000000e+00 : f32
    %295 = vector.broadcast %cst_138 : f32 to vector<16x32xf32>
    %296 = arith.select %77, %294, %295 : vector<16x32xi1>, vector<16x32xf32>
    %cst_139 = arith.constant dense<0.000000e+00> : vector<16xf32>
    %297 = vector.multi_reduction <add>, %296, %cst_139 [1] : vector<16x32xf32> to vector<16xf32>
    %298 = vector.shape_cast %297 : vector<16xf32> to vector<16x1xf32>
    %cst_140 = arith.constant 0.000000e+00 : f32
    %299 = vector.broadcast %cst_140 : f32 to vector<16x32xf32>
    %300 = arith.select %80, %294, %299 : vector<16x32xi1>, vector<16x32xf32>
    %cst_141 = arith.constant dense<0.000000e+00> : vector<16xf32>
    %301 = vector.multi_reduction <add>, %300, %cst_141 [1] : vector<16x32xf32> to vector<16xf32>
    %302 = vector.shape_cast %301 : vector<16xf32> to vector<16x1xf32>
    %303 = arith.index_cast %c7_i32 : i32 to index
    %c0_142 = arith.constant 0 : index
    %c0_143 = arith.constant 0 : index
    %304 = vector.load %arg18[%303, %c0_142, %c0_143] : memref<8x16x64xf32, #tpu.memory_space<vmem>>, vector<1x16x64xf32>
    %305 = vector.shape_cast %304 : vector<1x16x64xf32> to vector<16x64xf32>
    %c0_144 = arith.constant 0 : index
    %c0_145 = arith.constant 0 : index
    %306 = vector.load %arg13[%c0_144, %c0_145] : memref<16x64xf32, #tpu.memory_space<vmem>>, vector<16x64xf32>
    %307 = arith.mulf %305, %306 : vector<16x64xf32>
    %308 = arith.index_cast %c7_i32 : i32 to index
    %c0_146 = arith.constant 0 : index
    %309 = vector.load %arg15[%308, %c0_146] : memref<8x64xf32, #tpu.memory_space<vmem>>, vector<1x64xf32>
    %310 = vector.broadcast %298 : vector<16x1xf32> to vector<16x64xf32>
    %311 = vector.broadcast %309 : vector<1x64xf32> to vector<16x64xf32>
    %312 = arith.mulf %310, %311 : vector<16x64xf32>
    %313 = arith.addf %307, %312 : vector<16x64xf32>
    %c0_147 = arith.constant 0 : index
    %c0_148 = arith.constant 0 : index
    %314 = vector.load %arg13[%c0_147, %c0_148] : memref<16x64xf32, #tpu.memory_space<vmem>>, vector<16x64xf32>
    tpu.vector_store %arg13[%c0_147, %c0_148], %313 {strides = array<i32>} : memref<16x64xf32, #tpu.memory_space<vmem>>, vector<16x64xf32>,
    %315 = vector.broadcast %302 : vector<16x1xf32> to vector<16x64xf32>
    %316 = arith.mulf %313, %315 : vector<16x64xf32>
    %cst_149 = arith.constant dense<0.000000e+00> : vector<64xf32>
    %317 = vector.multi_reduction <add>, %316, %cst_149 [0] : vector<16x64xf32> to vector<64xf32>
    %318 = vector.shape_cast %317 : vector<64xf32> to vector<1x64xf32>
    %319 = arith.index_cast %c7_i32 : i32 to index
    %c0_150 = arith.constant 0 : index
    %320 = vector.load %arg19[%319, %c0_150] : memref<8x64xf32, #tpu.memory_space<vmem>>, vector<1x64xf32>
    tpu.vector_store %arg19[%319, %c0_150], %318 {strides = array<i32>} : memref<8x64xf32, #tpu.memory_space<vmem>>, vector<1x64xf32>,
    %c8_i32 = arith.constant 8 : i32
    %c0_151 = arith.constant 0 : index
    %c0_152 = arith.constant 0 : index
    %321 = vector.load %arg14[%c0_151, %c0_152] : memref<8x64xf32, #tpu.memory_space<vmem>>, vector<8x64xf32>
    %c0_153 = arith.constant 0 : index
    %c0_154 = arith.constant 0 : index
    %322 = vector.load %arg19[%c0_153, %c0_154] : memref<8x64xf32, #tpu.memory_space<vmem>>, vector<8x64xf32>
    %c0_155 = arith.constant 0 : index
    %c0_156 = arith.constant 0 : index
    %323 = vector.load %arg10[%c0_155, %c0_156] : memref<1x64xf32, #tpu.memory_space<vmem>>, vector<1x64xf32>
    %324 = vector.broadcast %323 : vector<1x64xf32> to vector<8x64xf32>
    %325 = arith.mulf %321, %324 : vector<8x64xf32>
    %326 = arith.addf %322, %325 : vector<8x64xf32>
    %c0_157 = arith.constant 0 : index
    %c0_158 = arith.constant 0 : index
    %327 = vector.load %arg16[%c0_157, %c0_158] : memref<8x64xf32, #tpu.memory_space<vmem>>, vector<8x64xf32>
    %328 = arith.negf %327 : vector<8x64xf32>
    %329 = math.exp %328 : vector<8x64xf32>
    %cst_159 = arith.constant 1.000000e+00 : f32
    %330 = vector.broadcast %cst_159 : f32 to vector<8x64xf32>
    %331 = arith.addf %330, %329 : vector<8x64xf32>
    %332 = arith.divf %330, %331 : vector<8x64xf32>
    %333 = arith.mulf %327, %332 : vector<8x64xf32>
    %334 = arith.mulf %326, %333 : vector<8x64xf32>
    %335 = arith.truncf %334 : vector<8x64xf32> to vector<8x64xbf16>
    %c0_160 = arith.constant 0 : index
    %c0_161 = arith.constant 0 : index
    %c0_162 = arith.constant 0 : index
    %336 = vector.load %arg11[%c0_160, %c0_161, %c0_162] : memref<1x8x64xbf16, #tpu.memory_space<vmem>>, vector<1x8x64xbf16>
    %337 = vector.shape_cast %336 : vector<1x8x64xbf16> to vector<8x64xbf16>
    %338 = vector.shape_cast %335 : vector<8x64xbf16> to vector<1x8x64xbf16>
    tpu.vector_store %arg11[%c0_160, %c0_161, %c0_162], %338 {strides = array<i32>} : memref<1x8x64xbf16, #tpu.memory_space<vmem>>, vector<1x8x64xbf16>,
    return
  }
  func.func @transform_0(%arg0: i32, %arg1: i32) -> (i32, i32, i32) {
    %c0_i32 = arith.constant 0 : i32
    %c0_i32_0 = arith.constant 0 : i32
    return %arg0, %arg1, %c0_i32 : i32, i32, i32
  }
  func.func @transform_1(%arg0: i32, %arg1: i32) -> (i32, i32) {
    %c0_i32 = arith.constant 0 : i32
    %c0_i32_0 = arith.constant 0 : i32
    %c0_i32_1 = arith.constant 0 : i32
    return %c0_i32, %c0_i32_0 : i32, i32
  }
  func.func @transform_2(%arg0: i32, %arg1: i32) -> (i32, i32) {
    %c0_i32 = arith.constant 0 : i32
    %c0_i32_0 = arith.constant 0 : i32
    %c0_i32_1 = arith.constant 0 : i32
    return %c0_i32, %c0_i32_0 : i32, i32
  }
  func.func @transform_3(%arg0: i32, %arg1: i32) -> (i32, i32) {
    %c0_i32 = arith.constant 0 : i32
    %c0_i32_0 = arith.constant 0 : i32
    %c0_i32_1 = arith.constant 0 : i32
    return %c0_i32, %c0_i32_0 : i32, i32
  }
  func.func @transform_4(%arg0: i32, %arg1: i32) -> (i32, i32) {
    %c0_i32 = arith.constant 0 : i32
    %c0_i32_0 = arith.constant 0 : i32
    %c0_i32_1 = arith.constant 0 : i32
    return %c0_i32, %c0_i32_0 : i32, i32
  }
  func.func @transform_5(%arg0: i32, %arg1: i32) -> (i32, i32) {
    %c0_i32 = arith.constant 0 : i32
    %c0_i32_0 = arith.constant 0 : i32
    %c0_i32_1 = arith.constant 0 : i32
    return %c0_i32, %c0_i32_0 : i32, i32
  }
  func.func @transform_6(%arg0: i32, %arg1: i32) -> (i32, i32) {
    %c0_i32 = arith.constant 0 : i32
    %c0_i32_0 = arith.constant 0 : i32
    %c0_i32_1 = arith.constant 0 : i32
    return %c0_i32, %c0_i32_0 : i32, i32
  }
  func.func @transform_7(%arg0: i32, %arg1: i32) -> (i32, i32) {
    %c0_i32 = arith.constant 0 : i32
    %c0_i32_0 = arith.constant 0 : i32
    %c0_i32_1 = arith.constant 0 : i32
    return %c0_i32, %c0_i32_0 : i32, i32
  }
  func.func @transform_8(%arg0: i32, %arg1: i32) -> (i32, i32) {
    %c0_i32 = arith.constant 0 : i32
    %c0_i32_0 = arith.constant 0 : i32
    %c0_i32_1 = arith.constant 0 : i32
    return %c0_i32, %c0_i32_0 : i32, i32
  }
  func.func @transform_9(%arg0: i32, %arg1: i32) -> (i32, i32, i32) {
    %c0_i32 = arith.constant 0 : i32
    %c0_i32_0 = arith.constant 0 : i32
    return %arg0, %arg1, %c0_i32 : i32, i32, i32
  }
}

module attributes {stable_mosaic.version = 11 : i64} {
  func.func @_matmul_kernel(%arg0: i32, %arg1: i32, %arg2: i32, %arg3: memref<16x128xbf16, #tpu.memory_space<vmem>>, %arg4: memref<128x128xbf16, #tpu.memory_space<vmem>>, %arg5: memref<16x128xbf16, #tpu.memory_space<vmem>>, %arg6: memref<16x128xf32, #tpu.memory_space<vmem>>) attributes {dimension_semantics = [#tpu.dimension_semantics<parallel>, #tpu.dimension_semantics<parallel>, #tpu.dimension_semantics<arbitrary>], iteration_bounds = array<i64: 1, 1, 1>, scalar_prefetch = 0 : i64, scratch_operands = 1 : i64, tpu.core_type = #tpu.core_type<tc>, window_params = [{transform_indices = @transform_0, window_bounds = array<i64: 16, 128>}, {transform_indices = @transform_1, window_bounds = array<i64: 128, 128>}, {transform_indices = @transform_2, window_bounds = array<i64: 16, 128>}]} {
    %c0_i32 = arith.constant 0 : i32
    %0 = arith.cmpi eq, %arg2, %c0_i32 : i32
    %1 = arith.extui %0 : i1 to i32
    %c0_i32_0 = arith.constant 0 : i32
    %2 = arith.cmpi ne, %1, %c0_i32_0 : i32
    scf.if %2 {
      %cst_10 = arith.constant 0.000000e+00 : f32
      %12 = vector.broadcast %cst_10 : f32 to vector<16x128xf32>
      %c0_11 = arith.constant 0 : index
      %c0_12 = arith.constant 0 : index
      %13 = vector.load %arg6[%c0_11, %c0_12] : memref<16x128xf32, #tpu.memory_space<vmem>>, vector<16x128xf32>
      tpu.vector_store %arg6[%c0_11, %c0_12], %12 {strides = array<i32>} : memref<16x128xf32, #tpu.memory_space<vmem>>, vector<16x128xf32>,
    } else {
    }
    %c0 = arith.constant 0 : index
    %c0_1 = arith.constant 0 : index
    %3 = vector.load %arg6[%c0, %c0_1] : memref<16x128xf32, #tpu.memory_space<vmem>>, vector<16x128xf32>
    %c0_2 = arith.constant 0 : index
    %c0_3 = arith.constant 0 : index
    %4 = vector.load %arg3[%c0_2, %c0_3] : memref<16x128xbf16, #tpu.memory_space<vmem>>, vector<16x128xbf16>
    %c0_4 = arith.constant 0 : index
    %c0_5 = arith.constant 0 : index
    %5 = vector.load %arg4[%c0_4, %c0_5] : memref<128x128xbf16, #tpu.memory_space<vmem>>, vector<128x128xbf16>
    %cst = arith.constant dense<0.000000e+00> : vector<16x128xf32>
    %6 = tpu.matmul %4, %5, %cst {dimension_numbers = #tpu.dot_dimension_numbers<[1], [0], [0], [1], [0, 0, 1, 1], [], []>} : vector<16x128xbf16>, vector<128x128xbf16>, vector<16x128xf32> -> vector<16x128xf32>
    %7 = arith.addf %3, %6 : vector<16x128xf32>
    %c0_6 = arith.constant 0 : index
    %c0_7 = arith.constant 0 : index
    %8 = vector.load %arg6[%c0_6, %c0_7] : memref<16x128xf32, #tpu.memory_space<vmem>>, vector<16x128xf32>
    tpu.vector_store %arg6[%c0_6, %c0_7], %7 {strides = array<i32>} : memref<16x128xf32, #tpu.memory_space<vmem>>, vector<16x128xf32>,
    %c0_i32_8 = arith.constant 0 : i32
    %9 = arith.cmpi eq, %arg2, %c0_i32_8 : i32
    %10 = arith.extui %9 : i1 to i32
    %c0_i32_9 = arith.constant 0 : i32
    %11 = arith.cmpi ne, %10, %c0_i32_9 : i32
    scf.if %11 {
      %c0_10 = arith.constant 0 : index
      %c0_11 = arith.constant 0 : index
      %12 = vector.load %arg6[%c0_10, %c0_11] : memref<16x128xf32, #tpu.memory_space<vmem>>, vector<16x128xf32>
      %13 = arith.truncf %12 : vector<16x128xf32> to vector<16x128xbf16>
      %c0_12 = arith.constant 0 : index
      %c0_13 = arith.constant 0 : index
      %14 = vector.load %arg5[%c0_12, %c0_13] : memref<16x128xbf16, #tpu.memory_space<vmem>>, vector<16x128xbf16>
      tpu.vector_store %arg5[%c0_12, %c0_13], %13 {strides = array<i32>} : memref<16x128xbf16, #tpu.memory_space<vmem>>, vector<16x128xbf16>,
    } else {
    }
    return
  }
  func.func @transform_0(%arg0: i32, %arg1: i32, %arg2: i32) -> (i32, i32) {
    %c0_i32 = arith.constant 0 : i32
    return %arg0, %arg2 : i32, i32
  }
  func.func @transform_1(%arg0: i32, %arg1: i32, %arg2: i32) -> (i32, i32) {
    %c0_i32 = arith.constant 0 : i32
    return %arg2, %arg1 : i32, i32
  }
  func.func @transform_2(%arg0: i32, %arg1: i32, %arg2: i32) -> (i32, i32) {
    %c0_i32 = arith.constant 0 : i32
    return %arg0, %arg1 : i32, i32
  }
}

module attributes {stable_mosaic.version = 11 : i64} {
  func.func @_rmsnorm_kernel(%arg0: i32, %arg1: i32, %arg2: memref<1x8x32xbf16, #tpu.memory_space<vmem>>, %arg3: memref<1x8x32xbf16, #tpu.memory_space<vmem>>, %arg4: memref<1x32xf32, #tpu.memory_space<vmem>>, %arg5: memref<1x8x32xbf16, #tpu.memory_space<vmem>>) attributes {dimension_semantics = [#tpu.dimension_semantics<parallel>, #tpu.dimension_semantics<parallel>], iteration_bounds = array<i64: 2, 1>, scalar_prefetch = 0 : i64, scratch_operands = 0 : i64, tpu.core_type = #tpu.core_type<tc>, window_params = [{transform_indices = @transform_0, window_bounds = array<i64: 1, 8, 32>}, {transform_indices = @transform_1, window_bounds = array<i64: 1, 8, 32>}, {pipeline_mode = #tpu.pipeline_mode<synchronous>, transform_indices = @transform_2, window_bounds = array<i64: 1, 32>}, {transform_indices = @transform_3, window_bounds = array<i64: 1, 8, 32>}]} {
    %c0 = arith.constant 0 : index
    %c0_0 = arith.constant 0 : index
    %c0_1 = arith.constant 0 : index
    %0 = vector.load %arg2[%c0, %c0_0, %c0_1] : memref<1x8x32xbf16, #tpu.memory_space<vmem>>, vector<1x8x32xbf16>
    %1 = vector.shape_cast %0 : vector<1x8x32xbf16> to vector<8x32xbf16>
    %2 = arith.extf %1 : vector<8x32xbf16> to vector<8x32xf32>
    %c0_2 = arith.constant 0 : index
    %c0_3 = arith.constant 0 : index
    %c0_4 = arith.constant 0 : index
    %3 = vector.load %arg3[%c0_2, %c0_3, %c0_4] : memref<1x8x32xbf16, #tpu.memory_space<vmem>>, vector<1x8x32xbf16>
    %4 = vector.shape_cast %3 : vector<1x8x32xbf16> to vector<8x32xbf16>
    %5 = arith.extf %4 : vector<8x32xbf16> to vector<8x32xf32>
    %6 = arith.addf %2, %5 : vector<8x32xf32>
    %7 = arith.mulf %6, %6 : vector<8x32xf32>
    %cst = arith.constant dense<0.000000e+00> : vector<8xf32>
    %8 = vector.multi_reduction <add>, %7, %cst [1] : vector<8x32xf32> to vector<8xf32>
    %9 = vector.shape_cast %8 : vector<8xf32> to vector<8x1xf32>
    %cst_5 = arith.constant 3.200000e+01 : f32
    %10 = vector.broadcast %cst_5 : f32 to vector<8x1xf32>
    %11 = arith.divf %9, %10 : vector<8x1xf32>
    %cst_6 = arith.constant 9.99999974E-6 : f32
    %12 = vector.broadcast %cst_6 : f32 to vector<8x1xf32>
    %13 = arith.addf %11, %12 : vector<8x1xf32>
    %14 = math.rsqrt %13 : vector<8x1xf32>
    %15 = vector.broadcast %14 : vector<8x1xf32> to vector<8x32xf32>
    %16 = arith.mulf %6, %15 : vector<8x32xf32>
    %c0_7 = arith.constant 0 : index
    %c0_8 = arith.constant 0 : index
    %17 = vector.load %arg4[%c0_7, %c0_8] : memref<1x32xf32, #tpu.memory_space<vmem>>, vector<1x32xf32>
    %18 = vector.broadcast %17 : vector<1x32xf32> to vector<8x32xf32>
    %19 = arith.mulf %16, %18 : vector<8x32xf32>
    %20 = arith.truncf %19 : vector<8x32xf32> to vector<8x32xbf16>
    %c0_9 = arith.constant 0 : index
    %c0_10 = arith.constant 0 : index
    %c0_11 = arith.constant 0 : index
    %21 = vector.load %arg5[%c0_9, %c0_10, %c0_11] : memref<1x8x32xbf16, #tpu.memory_space<vmem>>, vector<1x8x32xbf16>
    %22 = vector.shape_cast %21 : vector<1x8x32xbf16> to vector<8x32xbf16>
    %23 = vector.shape_cast %20 : vector<8x32xbf16> to vector<1x8x32xbf16>
    tpu.vector_store %arg5[%c0_9, %c0_10, %c0_11], %23 {strides = array<i32>} : memref<1x8x32xbf16, #tpu.memory_space<vmem>>, vector<1x8x32xbf16>,
    return
  }
  func.func @transform_0(%arg0: i32, %arg1: i32) -> (i32, i32, i32) {
    %c0_i32 = arith.constant 0 : i32
    %c0_i32_0 = arith.constant 0 : i32
    return %arg0, %arg1, %c0_i32 : i32, i32, i32
  }
  func.func @transform_1(%arg0: i32, %arg1: i32) -> (i32, i32, i32) {
    %c0_i32 = arith.constant 0 : i32
    %c0_i32_0 = arith.constant 0 : i32
    return %arg0, %arg1, %c0_i32 : i32, i32, i32
  }
  func.func @transform_2(%arg0: i32, %arg1: i32) -> (i32, i32) {
    %c0_i32 = arith.constant 0 : i32
    %c0_i32_0 = arith.constant 0 : i32
    %c0_i32_1 = arith.constant 0 : i32
    return %c0_i32, %c0_i32_0 : i32, i32
  }
  func.func @transform_3(%arg0: i32, %arg1: i32) -> (i32, i32, i32) {
    %c0_i32 = arith.constant 0 : i32
    %c0_i32_0 = arith.constant 0 : i32
    return %arg0, %arg1, %c0_i32 : i32, i32, i32
  }
}

module attributes {stable_mosaic.version = 11 : i64} {
  func.func @_matmul_kernel(%arg0: i32, %arg1: i32, %arg2: i32, %arg3: memref<16x128xbf16, #tpu.memory_space<vmem>>, %arg4: memref<128x128xbf16, #tpu.memory_space<vmem>>, %arg5: memref<16x128xf32, #tpu.memory_space<vmem>>, %arg6: memref<16x128xf32, #tpu.memory_space<vmem>>) attributes {dimension_semantics = [#tpu.dimension_semantics<parallel>, #tpu.dimension_semantics<parallel>, #tpu.dimension_semantics<arbitrary>], iteration_bounds = array<i64: 1, 1, 1>, scalar_prefetch = 0 : i64, scratch_operands = 1 : i64, tpu.core_type = #tpu.core_type<tc>, window_params = [{transform_indices = @transform_0, window_bounds = array<i64: 16, 128>}, {transform_indices = @transform_1, window_bounds = array<i64: 128, 128>}, {transform_indices = @transform_2, window_bounds = array<i64: 16, 128>}]} {
    %c0_i32 = arith.constant 0 : i32
    %0 = arith.cmpi eq, %arg2, %c0_i32 : i32
    %1 = arith.extui %0 : i1 to i32
    %c0_i32_0 = arith.constant 0 : i32
    %2 = arith.cmpi ne, %1, %c0_i32_0 : i32
    scf.if %2 {
      %cst_10 = arith.constant 0.000000e+00 : f32
      %12 = vector.broadcast %cst_10 : f32 to vector<16x128xf32>
      %c0_11 = arith.constant 0 : index
      %c0_12 = arith.constant 0 : index
      %13 = vector.load %arg6[%c0_11, %c0_12] : memref<16x128xf32, #tpu.memory_space<vmem>>, vector<16x128xf32>
      tpu.vector_store %arg6[%c0_11, %c0_12], %12 {strides = array<i32>} : memref<16x128xf32, #tpu.memory_space<vmem>>, vector<16x128xf32>,
    } else {
    }
    %c0 = arith.constant 0 : index
    %c0_1 = arith.constant 0 : index
    %3 = vector.load %arg6[%c0, %c0_1] : memref<16x128xf32, #tpu.memory_space<vmem>>, vector<16x128xf32>
    %c0_2 = arith.constant 0 : index
    %c0_3 = arith.constant 0 : index
    %4 = vector.load %arg3[%c0_2, %c0_3] : memref<16x128xbf16, #tpu.memory_space<vmem>>, vector<16x128xbf16>
    %c0_4 = arith.constant 0 : index
    %c0_5 = arith.constant 0 : index
    %5 = vector.load %arg4[%c0_4, %c0_5] : memref<128x128xbf16, #tpu.memory_space<vmem>>, vector<128x128xbf16>
    %cst = arith.constant dense<0.000000e+00> : vector<16x128xf32>
    %6 = tpu.matmul %4, %5, %cst {dimension_numbers = #tpu.dot_dimension_numbers<[1], [0], [0], [1], [0, 0, 1, 1], [], []>} : vector<16x128xbf16>, vector<128x128xbf16>, vector<16x128xf32> -> vector<16x128xf32>
    %7 = arith.addf %3, %6 : vector<16x128xf32>
    %c0_6 = arith.constant 0 : index
    %c0_7 = arith.constant 0 : index
    %8 = vector.load %arg6[%c0_6, %c0_7] : memref<16x128xf32, #tpu.memory_space<vmem>>, vector<16x128xf32>
    tpu.vector_store %arg6[%c0_6, %c0_7], %7 {strides = array<i32>} : memref<16x128xf32, #tpu.memory_space<vmem>>, vector<16x128xf32>,
    %c0_i32_8 = arith.constant 0 : i32
    %9 = arith.cmpi eq, %arg2, %c0_i32_8 : i32
    %10 = arith.extui %9 : i1 to i32
    %c0_i32_9 = arith.constant 0 : i32
    %11 = arith.cmpi ne, %10, %c0_i32_9 : i32
    scf.if %11 {
      %c0_10 = arith.constant 0 : index
      %c0_11 = arith.constant 0 : index
      %12 = vector.load %arg6[%c0_10, %c0_11] : memref<16x128xf32, #tpu.memory_space<vmem>>, vector<16x128xf32>
      %c0_12 = arith.constant 0 : index
      %c0_13 = arith.constant 0 : index
      %13 = vector.load %arg5[%c0_12, %c0_13] : memref<16x128xf32, #tpu.memory_space<vmem>>, vector<16x128xf32>
      tpu.vector_store %arg5[%c0_12, %c0_13], %12 {strides = array<i32>} : memref<16x128xf32, #tpu.memory_space<vmem>>, vector<16x128xf32>,
    } else {
    }
    return
  }
  func.func @transform_0(%arg0: i32, %arg1: i32, %arg2: i32) -> (i32, i32) {
    %c0_i32 = arith.constant 0 : i32
    return %arg0, %arg2 : i32, i32
  }
  func.func @transform_1(%arg0: i32, %arg1: i32, %arg2: i32) -> (i32, i32) {
    %c0_i32 = arith.constant 0 : i32
    return %arg2, %arg1 : i32, i32
  }
  func.func @transform_2(%arg0: i32, %arg1: i32, %arg2: i32) -> (i32, i32) {
    %c0_i32 = arith.constant 0 : i32
    return %arg0, %arg1 : i32, i32
  }
}

</mosaic_0001>

<bundles_post_ra>
// kernel: mamba_forward.14
= control target key start
LH: loop header
LB: loop body
LE: loop exit
PB: predicated region body
PF: predicated region fallthrough
CT: control target
= control target key end

     0   :  { %s417_s12 = smov 0   ;;  %s419_s13 = smov 0   ;;  %s450_s0 = inlined_call_operand.vmem [shape: bf16[2,8,32], index: 0, kind: input, shape index: {}, may-alias: {0,1}]   ;;  %s451_s1 = inlined_call_operand.vmem [shape: bf16[2,8,32], index: 1, kind: input, shape index: {}, may-alias: {0,1}]   ;;  %s452_s2 = inlined_call_operand.vmem [shape: f32[1,32], index: 2, kind: input, shape index: {}]   ;;  %s453_s3 = inlined_call_operand.vmem [shape: bf16[2,8,32], index: 3, kind: output, shape index: {}]  }
   0x1   :  { %s421_s14 = smov 0  }
   0x2 LB: > { %s25_s1 = sadd.s32 1, %s391_s13  ;;  %p341_p0 = scmp.ge.s32.totalorder %s395_s14, 1  ;;  %s395_s14 = sphi %s421_s14, %s13_s14   ;;  %s391_s13 = sphi %s419_s13, %s455_s13   ;;  %s387_s12 = sphi %s417_s12, %s454_s12  }
   0x3   : > { %p27_p1 = scmp.ge.s32.totalorder %s25_s1, 2  ;;  %p169_p2 = scmp.lt.s32.totalorder %s395_s14, 3 }
   0x5   : > { %s457_s1 = smov (%p27_p1, %s25_s1), 0  ;;  %p170_p3 = pnand %p341_p0, %p169_p2 }
   0x6   : > { %p204_p4 = scmp.lt.s32.totalorder (!%p170_p3), %s387_s12, 1  ;;  %vm228_vm0 = vcmask (!%p170_p3), 261120   ;;  %v344_v8 = vld [vmem:[%s452_s2] ss:$0 sm:$0xff] (!%p170_p3)  ;;  %vm246_vm1 = vcmask (!%p170_p3), 257024  }
   0x7   : > { %173 = sbr.rel (%p170_p3) target bundleno = 187 (0xbb), region = 32 }
   0xe   : > { %s459_s12 = smov (!%p204_p4, %s387_s12), 1 }
   0xf   : > { %s342_s15 = sshll.u32 %s459_s12, 2 }
  0x10   : > { %s210_s18 = scalar_lea.vmem %s450_s0, %s342_s15  ;;  %s224_s23 = scalar_lea.vmem %s453_s3, %s342_s15 }
  0x11   : > { %v225_v0 = vld [vmem:[%s210_s18] sm:$0xf] }
  0x12   : > { %v226_v1 = vunpack.c.l.bf16 %v225_v0 }
  0x14   : > { %v227_v2 = vmul.f32 %v226_v1, %v226_v1 }
  0x16   : > { %v229_v3 = vsel %vm228_vm0, %v227_v2, 0.0 }
  0x17   : > { %230 = vadd.xlane.f32.xlu0 %v229_v3 }
  0xa4   : > { %v231_v4 = vpop.xlane.xlu0 %230 }
  0xa5   : > { %v233_v5 = vmul.f32 0.03125, %v231_v4 }
  0xa7   : > { %v234_v6 = vadd.f32 1e-05, %v233_v5 }
  0xa9   : > { %371 = vrsqrt.f32 %v234_v6 }
  0xb3   : > { %v372_v7 = vpop.eup %371 }
  0xb4   : > { %v236_v9 = vmul.f32 %v372_v7, %v226_v1 }
  0xb6   : > { %v244_v10 = vmul.f32 %v344_v8, %v236_v9 }
  0xb8   : > { %v245_v11 = vpack.c.bf16 %v244_v10, %v244_v10 }
  0xba   : > { %247 = vst.msk [vmem:[%s224_s23] sm:$0xf] %vm246_vm1, %v245_v11 }
  0xbb PF: > { %s13_s14 = sadd.s32 1, %s395_s14   ;;  %s454_s12 = smov %s391_s13 }
  0xbc   : > { %p10_p5 = scmp.ge.s32.totalorder %s13_s14, 4   ;;  %s455_s13 = smov %s457_s1 }
  0xbe   :  { %12 = sbr.rel (!%p10_p5) target bundleno = 2 (0x2), region = 65 }

// kernel: mamba_forward.10
= control target key start
LH: loop header
LB: loop body
LE: loop exit
PB: predicated region body
PF: predicated region fallthrough
CT: control target
= control target key end

     0   :  { %s421_s12 = smov 0   ;;  %s423_s13 = smov 0   ;;  %s460_s0 = inlined_call_operand.vmem [shape: bf16[2,8,32], index: 0, kind: input, shape index: {}]   ;;  %s461_s1 = inlined_call_operand.vmem [shape: bf16[2,8,32], index: 1, kind: input, shape index: {}]   ;;  %s462_s2 = inlined_call_operand.vmem [shape: f32[1,32], index: 2, kind: input, shape index: {}]   ;;  %s463_s3 = inlined_call_operand.vmem [shape: bf16[2,8,32], index: 3, kind: output, shape index: {}]  }
   0x1   :  { %s425_s14 = smov 0  }
   0x2 LB: > { %s25_s15 = sadd.s32 1, %s395_s13  ;;  %p344_p0 = scmp.ge.s32.totalorder %s399_s14, 1  ;;  %s399_s14 = sphi %s425_s14, %s13_s14   ;;  %s395_s13 = sphi %s423_s13, %s465_s13   ;;  %s391_s12 = sphi %s421_s12, %s464_s12  }
   0x3   : > { %p27_p1 = scmp.ge.s32.totalorder %s25_s15, 2  ;;  %p169_p2 = scmp.lt.s32.totalorder %s399_s14, 3 }
   0x5   : > { %s467_s15 = smov (%p27_p1, %s25_s15), 0  ;;  %p170_p3 = pnand %p344_p0, %p169_p2 }
   0x6   : > { %p204_p4 = scmp.lt.s32.totalorder (!%p170_p3), %s391_s12, 1  ;;  %vm231_vm0 = vcmask (!%p170_p3), 261120   ;;  %v348_v11 = vld [vmem:[%s462_s2] ss:$0 sm:$0xff] (!%p170_p3)  ;;  %vm249_vm1 = vcmask (!%p170_p3), 257024  }
   0x7   : > { %173 = sbr.rel (%p170_p3) target bundleno = 190 (0xbe), region = 32 }
   0xe   : > { %s469_s12 = smov (!%p204_p4, %s391_s12), 1 }
   0xf   : > { %s345_s16 = sshll.u32 %s469_s12, 2 }
  0x10   : > { %s210_s19 = scalar_lea.vmem %s460_s0, %s345_s16  ;;  %s217_s22 = scalar_lea.vmem %s461_s1, %s345_s16 }
  0x11   : > { %v225_v0 = vld [vmem:[%s210_s19] sm:$0xf]  ;;  %s224_s27 = scalar_lea.vmem %s463_s3, %s345_s16 }
  0x12   : > { %v227_v1 = vld [vmem:[%s217_s22] sm:$0xf]  ;;  %v226_v2 = vunpack.c.l.bf16 %v225_v0 }
  0x13   : > { %v228_v3 = vunpack.c.l.bf16 %v227_v1 }
  0x15   : > { %v229_v4 = vadd.f32 %v228_v3, %v226_v2 }
  0x17   : > { %v230_v5 = vmul.f32 %v229_v4, %v229_v4 }
  0x19   : > { %v232_v6 = vsel %vm231_vm0, %v230_v5, 0.0 }
  0x1a   : > { %233 = vadd.xlane.f32.xlu0 %v232_v6 }
  0xa7   : > { %v234_v7 = vpop.xlane.xlu0 %233 }
  0xa8   : > { %v236_v8 = vmul.f32 0.03125, %v234_v7 }
  0xaa   : > { %v237_v9 = vadd.f32 1e-05, %v236_v8 }
  0xac   : > { %375 = vrsqrt.f32 %v237_v9 }
  0xb6   : > { %v376_v10 = vpop.eup %375 }
  0xb7   : > { %v239_v12 = vmul.f32 %v376_v10, %v229_v4 }
  0xb9   : > { %v247_v13 = vmul.f32 %v348_v11, %v239_v12 }
  0xbb   : > { %v248_v14 = vpack.c.bf16 %v247_v13, %v247_v13 }
  0xbd   : > { %250 = vst.msk [vmem:[%s224_s27] sm:$0xf] %vm249_vm1, %v248_v14 }
  0xbe PF: > { %s13_s14 = sadd.s32 1, %s399_s14   ;;  %s464_s12 = smov %s395_s13 }
  0xbf   : > { %p10_p5 = scmp.ge.s32.totalorder %s13_s14, 4   ;;  %s465_s13 = smov %s467_s15 }
  0xc1   :  { %12 = sbr.rel (!%p10_p5) target bundleno = 2 (0x2), region = 65 }

// kernel: mamba_forward.9
= control target key start
LH: loop header
LB: loop body
LE: loop exit
PB: predicated region body
PF: predicated region fallthrough
CT: control target
= control target key end

     0   :  { %v214_v0 = vmov 0.0   ;;  %vm215_vm0 = vmmov 0   ;;  %s261_s1 = inlined_call_operand.vmem [shape: bf16[128,128], index: 1, kind: input, shape index: {}]   ;;  %s262_s0 = inlined_call_operand.vmem [shape: bf16[16,128], index: 0, kind: input, shape index: {}]   ;;  %s263_s2 = inlined_call_operand.vmem [shape: bf16[16,128], index: 2, kind: output, shape index: {}]  }
   0x1   :  { %183 = vmatprep.subr.bf16.mxu0 %v214_v0  ;;  %v205_v1 = vld [vmem:[%s261_s1] sm:$0xff]   ;;  %199 = vmatprep.mubr.msk.bf16.mxu0 %vm215_vm0, %v214_v0  ;;  %v206_v2 = vld [vmem:[%s261_s1 + $0x8] sm:$0xff]   ;;  %v207_v3 = vld [vmem:[%s261_s1 + $0x10] sm:$0xff]  }
   0x2   :  { %184 = vmatpush3.bf16.msra.mxu0 %v205_v1  ;;  %v208_v4 = vld [vmem:[%s261_s1 + $0x18] sm:$0xff]   ;;  %v209_v5 = vld [vmem:[%s261_s1 + $0x20] sm:$0xff]   ;;  %v210_v6 = vld [vmem:[%s261_s1 + $0x28] sm:$0xff]  }
   0x3   :  { %185 = vmatprep.subr.bf16.mxu0 %v214_v0  ;;  %v211_v7 = vld [vmem:[%s261_s1 + $0x30] sm:$0xff]   ;;  %v212_v8 = vld [vmem:[%s261_s1 + $0x38] sm:$0xff]   ;;  %v213_v9 = vld [vmem:[%s262_s0] sm:$0xff]  }
   0x6   :  { %186 = vmatpush3.bf16.msra.mxu0 %v206_v2 }
   0x7   :  { %187 = vmatprep.subr.bf16.mxu0 %v214_v0 }
   0xa   :  { %188 = vmatpush3.bf16.msra.mxu0 %v207_v3 }
   0xb   :  { %189 = vmatprep.subr.bf16.mxu0 %v214_v0 }
   0xe   :  { %190 = vmatpush3.bf16.msra.mxu0 %v208_v4 }
   0xf   :  { %191 = vmatprep.subr.bf16.mxu0 %v214_v0 }
  0x12   :  { %192 = vmatpush3.bf16.msra.mxu0 %v209_v5 }
  0x13   :  { %193 = vmatprep.subr.bf16.mxu0 %v214_v0 }
  0x16   :  { %194 = vmatpush3.bf16.msra.mxu0 %v210_v6 }
  0x17   :  { %195 = vmatprep.subr.bf16.mxu0 %v214_v0 }
  0x1a   :  { %196 = vmatpush3.bf16.msra.mxu0 %v211_v7 }
  0x1b   :  { %197 = vmatprep.subr.bf16.mxu0 %v214_v0 }
  0x1e   :  { %198 = vmatpush3.bf16.msra.mxu0 %v212_v8 }
  0x21   :  { %200 = vmatmul.mubr.bf16.vlgmr.msra.gmra.mrb[0].mxu0 %v213_v9 }
  0xf4   :  { %v126_v10 = vpop.f32.mrb[0].mxu0 }
  0xf5   :  { %v201_v11 = vpop.f32.mrb[1].mxu0 }
  0xf6   :  { %v129_v12 = vpop.f32.mrb[2].mxu0 }
  0xf7   :  { %v172_v13 = vpack.c.bf16 %v129_v12, %v126_v10  ;;  %v202_v14 = vpop.f32.mrb[3].mxu0 }
  0xf9   :  { %173 = vst [vmem:[%s263_s2] sm:$0xff] %v172_v13  }

// kernel: mamba_forward.15
= control target key start
LH: loop header
LB: loop body
LE: loop exit
PB: predicated region body
PF: predicated region fallthrough
CT: control target
= control target key end

     0   :  { %v197_v0 = vmov 0.0   ;;  %vm198_vm0 = vmmov 0   ;;  %s247_s1 = inlined_call_operand.vmem [shape: bf16[128,128], index: 1, kind: input, shape index: {}]   ;;  %s248_s0 = inlined_call_operand.vmem [shape: bf16[16,128], index: 0, kind: input, shape index: {}]   ;;  %s249_s2 = inlined_call_operand.vmem [shape: f32[16,128], index: 2, kind: output, shape index: {}]  }
   0x1   :  { %166 = vmatprep.subr.bf16.mxu0 %v197_v0  ;;  %v188_v1 = vld [vmem:[%s247_s1] sm:$0xff]   ;;  %182 = vmatprep.mubr.msk.bf16.mxu0 %vm198_vm0, %v197_v0  ;;  %v189_v2 = vld [vmem:[%s247_s1 + $0x8] sm:$0xff]   ;;  %v190_v3 = vld [vmem:[%s247_s1 + $0x10] sm:$0xff]  }
   0x2   :  { %167 = vmatpush3.bf16.msra.mxu0 %v188_v1  ;;  %v191_v4 = vld [vmem:[%s247_s1 + $0x18] sm:$0xff]   ;;  %v192_v5 = vld [vmem:[%s247_s1 + $0x20] sm:$0xff]   ;;  %v193_v6 = vld [vmem:[%s247_s1 + $0x28] sm:$0xff]  }
   0x3   :  { %168 = vmatprep.subr.bf16.mxu0 %v197_v0  ;;  %v194_v7 = vld [vmem:[%s247_s1 + $0x30] sm:$0xff]   ;;  %v195_v8 = vld [vmem:[%s247_s1 + $0x38] sm:$0xff]   ;;  %v196_v9 = vld [vmem:[%s248_s0] sm:$0xff]  }
   0x6   :  { %169 = vmatpush3.bf16.msra.mxu0 %v189_v2 }
   0x7   :  { %170 = vmatprep.subr.bf16.mxu0 %v197_v0 }
   0xa   :  { %171 = vmatpush3.bf16.msra.mxu0 %v190_v3 }
   0xb   :  { %172 = vmatprep.subr.bf16.mxu0 %v197_v0 }
   0xe   :  { %173 = vmatpush3.bf16.msra.mxu0 %v191_v4 }
   0xf   :  { %174 = vmatprep.subr.bf16.mxu0 %v197_v0 }
  0x12   :  { %175 = vmatpush3.bf16.msra.mxu0 %v192_v5 }
  0x13   :  { %176 = vmatprep.subr.bf16.mxu0 %v197_v0 }
  0x16   :  { %177 = vmatpush3.bf16.msra.mxu0 %v193_v6 }
  0x17   :  { %178 = vmatprep.subr.bf16.mxu0 %v197_v0 }
  0x1a   :  { %179 = vmatpush3.bf16.msra.mxu0 %v194_v7 }
  0x1b   :  { %180 = vmatprep.subr.bf16.mxu0 %v197_v0 }
  0x1e   :  { %181 = vmatpush3.bf16.msra.mxu0 %v195_v8 }
  0x21   :  { %183 = vmatmul.mubr.bf16.vlgmr.msra.gmra.mrb[0].mxu0 %v196_v9 }
  0xf4   :  { %v126_v10 = vpop.f32.mrb[0].mxu0 }
  0xf5   :  { %142 = vst [vmem:[%s249_s2] sm:$0xff] %v126_v10  ;;  %v184_v11 = vpop.f32.mrb[1].mxu0 }
  0xf6   :  { %v129_v12 = vpop.f32.mrb[2].mxu0 }
  0xf7   :  { %143 = vst [vmem:[%s249_s2 + $0x8] sm:$0xff] %v129_v12  ;;  %v185_v13 = vpop.f32.mrb[3].mxu0 }

// kernel: mamba_forward.8
= control target key start
LH: loop header
LB: loop body
LE: loop exit
PB: predicated region body
PF: predicated region fallthrough
CT: control target
= control target key end

     0   :  { %s1594_s30 = smov 0   ;;  %s1596_s10 = smov 0   ;;  %s1972_s0 = inlined_call_operand.vmem [shape: bf16[2,8,32], index: 0, kind: input, shape index: {}]   ;;  %s1973_s1 = inlined_call_operand.vmem [shape: bf16[32,128], index: 1, kind: input, shape index: {}]   ;;  %s1974_s2 = inlined_call_operand.vmem [shape: f32[4,64], index: 2, kind: input, shape index: {}]   ;;  %s1975_s3 = inlined_call_operand.vmem [shape: f32[1,64], index: 3, kind: input, shape index: {}]   ;;  %s1976_s4 = inlined_call_operand.vmem [shape: bf16[64,128], index: 4, kind: input, shape index: {}]   ;;  %s1977_s5 = inlined_call_operand.vmem [shape: bf16[2,64], index: 5, kind: input, shape index: {}]   ;;  %s1978_s6 = inlined_call_operand.vmem [shape: f32[1,64], index: 6, kind: input, shape index: {}]   ;;  %s1979_s7 = inlined_call_operand.vmem [shape: f32[16,64], index: 7, kind: input, shape index: {}]   ;;  %s1980_s8 = inlined_call_operand.vmem [shape: f32[1,64], index: 8, kind: input, shape index: {}]   ;;  %s1981_s9 = inlined_call_operand.vmem [shape: bf16[2,8,64], index: 9, kind: output, shape index: {}]  }
   0x1   :  { %s1598_s11 = smov 0  }
   0x2 LB: > { %s31_s12 = sadd.s32 1, %s1533_s10  ;;  %p1360_p0 = scmp.ge.s32.totalorder %s1537_s11, 1  ;;  %s1537_s11 = sphi %s1598_s11, %s19_s11   ;;  %s1533_s10 = sphi %s1596_s10, %s1991_s10   ;;  %s1529_s30 = sphi %s1594_s30, %s1990_s30  }
   0x3   : > { %p33_p1 = scmp.ge.s32.totalorder %s31_s12, 2  ;;  %p305_p2 = scmp.lt.s32.totalorder %s1537_s11, 3 }
   0x5   : > { %s1993_s12 = smov (%p33_p1, %s31_s12), 0  ;;  %p306_p3 = pnand %p1360_p0, %p305_p2 }
   0x6   : > { %v1461_v0 = vld [vmem:[%s1973_s1] sm:$0xff] (!%p306_p3)   ;;  %v1539_v1 = vmov (!%p306_p3), 0.0   ;;  %v1462_v2 = vld [vmem:[%s1973_s1 + $0x8] sm:$0xff] (!%p306_p3)   ;;  %vm1540_vm0 = vmmov (!%p306_p3), 0   ;;  %p345_p4 = scmp.lt.s32.totalorder (!%p306_p3), %s1529_s30, 1  ;;  %vm364_vm1 = vcmask (!%p306_p3), 523264   ;;  %v431_v10 = vlaneseq (!%p306_p3) }
   0x7   : > { %309 = sbr.rel (%p306_p3) target bundleno = 892 (0x37c), region = 56  ;;  %1406 = vmatprep.subr.bf16.mxu0 (!%p306_p3), %v1539_v1  ;;  %1414 = vmatprep.subr.bf16.mxu1 (!%p306_p3), %v1539_v1  ;;  %367 = vst.msk [vmem:[#allocation2] sm:$0xff] (!%p306_p3), %vm364_vm1, %v1539_v1  ;;  %365 = vst.msk [vmem:[#allocation3] sm:$0xff] (!%p306_p3), %vm364_vm1, %v1539_v1  ;;  %vm385_vm2 = vcmask (!%p306_p3), 261120   ;;  %v1463_v4 = vld [vmem:[%s1976_s4] sm:$0xff] (!%p306_p3)   ;;  %v1464_v5 = vld [vmem:[%s1976_s4 + $0x8] sm:$0xff] (!%p306_p3)  }
   0x8   : > { %1407 = vmatpush3.bf16.msra.mxu0 (!%p306_p3), %v1461_v0  ;;  %1410 = vmatprep.mubr.msk.bf16.mxu0 (!%p306_p3), %vm1540_vm0, %v1539_v1  ;;  %366 = vst.msk [vmem:[#allocation3 + $0x8] sm:$0xff] (!%p306_p3), %vm364_vm1, %v1539_v1  ;;  %v1465_v6 = vld [vmem:[%s1976_s4 + $0x10] sm:$0xff] (!%p306_p3)   ;;  %v1466_v7 = vld [vmem:[%s1976_s4 + $0x18] sm:$0xff] (!%p306_p3)   ;;  %v591_v8 = vld [vmem:[%s1977_s5] sm:$0x1] (!%p306_p3)  ;;  %vm603_vm3 = vcmask (!%p306_p3), 1040384  }
   0x9   : > { %1408 = vmatprep.subr.bf16.mxu0 (!%p306_p3), %v1539_v1  ;;  %1422 = vmatprep.mubr.msk.bf16.mxu1 (!%p306_p3), %vm1540_vm0, %v1539_v1  ;;  %v605_v9 = vsel (!%p306_p3), %vm603_vm3, %v591_v8, 0  ;;  %v1649_v11 = vshrl.u32 (!%p306_p3), %v431_v10, 7  ;;  %v430_v13 = vld [vmem:[%s1974_s2] sm:$0xf] (!%p306_p3)  ;;  %vm447_vm4 = vcmask (!%p306_p3), 1046528   ;;  %vm463_vm5 = vcmask (!%p306_p3), 1045504  }
   0xa   : > { %1415 = vmatpush3.bf16.msra.mxu1 (!%p306_p3), %v1463_v4  ;;  %v1366_v44 = vld [vmem:[%s1975_s3] ss:$0 sm:$0xff] (!%p306_p3)  ;;  %vm819_vm6 = vcmask (!%p306_p3), 520192   ;;  %vm817_vm7 = vcmask (!%p306_p3), 523269   ;;  %vm823_vm8 = vcmask (!%p306_p3), 1042432   ;;  %vm599_vm9 = vcmask (!%p306_p3), 15360  }
   0xb   : > { %1416 = vmatprep.subr.bf16.mxu1 (!%p306_p3), %v1539_v1  ;;  %v441_v12 = vsub.s32 (!%p306_p3), 1, %v1649_v11  ;;  %v457_v14 = vsub.s32 (!%p306_p3), 2, %v1649_v11  ;;  %v1657_v18 = vsub.s32 (!%p306_p3), 0, %v1649_v11  ;;  %v473_v19 = vsub.s32 (!%p306_p3), 3, %v1649_v11  ;;  %s1541_s19 = smov (!%p306_p3), 126  }
   0xc   : > { %1409 = vmatpush3.bf16.msra.mxu0 (!%p306_p3), %v1462_v2 }
   0xd   : > { %1426 = vmatprep.subr.bf16.mxu0 (!%p306_p3), %v1539_v1  ;;  %v442_v15 = vrot.slane (!%p306_p3), %v430_v13, %v441_v12  ;;  %v458_v17 = vrot.slane (!%p306_p3), %v430_v13, %v457_v14  ;;  %v434_v22 = vrot.slane (!%p306_p3), %v430_v13, %v1657_v18  ;;  %v474_v23 = vrot.slane (!%p306_p3), %v430_v13, %v473_v19 }
   0xe   : > { %s1995_s30 = smov (!%p345_p4, %s1529_s30), 1  ;;  %1417 = vmatpush3.bf16.msra.mxu1 %v1464_v5  ;;  %v429_v16 = vld [vmem:[#allocation2] sm:$0xff]  ;;  %v1677_v12 = vand.u32 127, %v431_v10  ;;  %v1680_v13 = vadd.s32 8, %v1649_v11 }
   0xf   : > { %s1361_s17 = sshll.u32 %s1995_s30, 2  ;;  %1418 = vmatprep.subr.bf16.mxu1 %v1539_v1  ;;  %v443_v20 = vmul.f32 %v442_v15, %v429_v16  ;;  %v459_v21 = vmul.f32 %v458_v17, %v429_v16  ;;  %v435_v29 = vmul.f32 %v434_v22, %v429_v16 }
  0x10   : > { %s351_s20 = scalar_lea.vmem %s1972_s0, %s1361_s17  ;;  %vm1684_vm10 = vcmp.eq.s32.totalorder %v1677_v12, %v1680_v13  ;;  %vm1690_vm11 = vcmp.eq.s32.totalorder %v1677_v12, %v1649_v11  ;;  %s358_s14 = scalar_lea.vmem %s1981_s9, %s1361_s17 }
  0x11   : > { %v368_v3 = vld [vmem:[%s351_s20] sm:$0xf]  ;;  %v448_v26 = vrot.slane %v443_v20, 1  ;;  %v464_v30 = vrot.slane %v459_v21, 2  ;;  %s1542_s20 = smov 64  }
  0x12   : > { %1411 = vmatmul.mubr.msk.bf16.vlgmr.msra.gmra.mrb[0].mxu0 %vm385_vm2, %v368_v3  ;;  %1419 = vmatpush3.bf16.msra.mxu1 %v1465_v6 }
  0x13   : > { %1428 = vmatprep.mubr.msk.bf16.mxu0 %vm1540_vm0, %v1539_v1  ;;  %1420 = vmatprep.subr.bf16.mxu1 %v1539_v1  ;;  %vm900_vm0 = vcmask 516096  }
  0x14   : > { %1427 = vmatpush3.bf16.msra.mxu0 %v605_v9 }
  0x16   : > { %1421 = vmatpush3.bf16.msra.mxu1 %v1466_v7 }
  0xe5   : > { %v1661_v24 = vpop.f32.mrb[0].mxu0 }
  0xe6   : > { %v444_v25 = vmul.f32 %v442_v15, %v1661_v24  ;;  %v460_v27 = vmul.f32 %v458_v17, %v1661_v24  ;;  %505 = vst.msk [vmem:[#allocation2] sm:$0xff] %vm364_vm1, %v1661_v24  ;;  %v1412_v28 = vpop.f32.mrb[1].mxu0  ;;  %v436_v32 = vmul.f32 %v434_v22, %v1661_v24  ;;  %v475_v35 = vmul.f32 %v474_v23, %v1661_v24 }
  0xe7   : > { %v426_v31 = vpop.f32.mrb[2].mxu0 }
  0xe8   : > { %v449_v33 = vrot.slane %v444_v25, 1  ;;  %v465_v34 = vrot.slane %v460_v27, 2  ;;  %v1413_v36 = vpop.f32.mrb[3].mxu0  ;;  %v477_v42 = vrot.slane %v475_v35, 3 }
  0xea   : > { %v450_v37 = vsel %vm447_vm4, %v448_v26, %v449_v33  ;;  %v454_v38 = vadd.f32 %v449_v33, %v436_v32  ;;  %v466_v40 = vsel %vm463_vm5, %v464_v30, %v465_v34  ;;  %v847_v33 = vadd.s32 16, %v1649_v11 }
  0xeb   : > { %v453_v39 = vadd.f32 %v450_v37, %v435_v29 }
  0xec   : > { %v470_v41 = vadd.f32 %v465_v34, %v454_v38  ;;  %vm1738_vm12 = vcmp.eq.s32.totalorder %v1677_v12, %v847_v33 }
  0xed   : > { %v469_v43 = vadd.f32 %v466_v40, %v453_v39 }
  0xee   : > { %v480_v45 = vadd.f32 %v477_v42, %v470_v41 }
  0xef   : > { %v479_v46 = vadd.f32 %v477_v42, %v469_v43 }
  0xf0   : > { %v489_v47 = vadd.f32 %v1366_v44, %v480_v45 }
  0xf1   : > { %v488_v48 = vadd.f32 %v1366_v44, %v479_v46 }
  0xf2   : > { %v1368_v49 = vmul.f32 -1.442695, %v489_v47 }
  0xf3   : > { %v1367_v50 = vmul.f32 -1.442695, %v488_v48 }
  0xf4   : > { %1467 = vpow2.f32 %v1368_v49 }
  0xf5   : > { %1469 = vpow2.f32 %v1367_v50 }
  0xfe   : > { %v1468_v51 = vpop.eup %1467 }
  0xff   : > { %v1470_v52 = vpop.eup %1469  ;;  %v497_v53 = vadd.f32 1.0, %v1468_v51 }
 0x100   : > { %v496_v54 = vadd.f32 1.0, %v1470_v52 }
 0x101   : > { %1471 = vrcp.f32 %v497_v53 }
 0x102   : > { %1473 = vrcp.f32 %v496_v54 }
 0x10b   : > { %v1472_v55 = vpop.eup %1471 }
 0x10c   : > { %v1474_v56 = vpop.eup %1473  ;;  %v503_v57 = vmul.f32 %v1472_v55, %v489_v47 }
 0x10d   : > { %v502_v58 = vmul.f32 %v1474_v56, %v488_v48 }
 0x10e   : > { %820 = vst.msk [vmem:[#allocation4 + $0x3] sm:$0x1f] %vm819_vm6, %v503_v57  ;;  %v825_v59 = vrot.slane %v503_v57, 5 }
 0x10f   : > { %v506_v60 = vpack.c.bf16 %v503_v57, %v502_v58  ;;  %818 = vst.msk [vmem:[#allocation4 - $0x5] sm:$0xe0] %vm817_vm7, %v502_v58  ;;  %v824_v61 = vrot.slane %v502_v58, 5 }
 0x111   : > { %v516_v62 = vshrl.u32 %v506_v60, 16  ;;  %v519_v63 = vshll.u32 %v506_v60, 16  ;;  %v1672_v0 = vsel %vm823_vm8, %v824_v61, %v825_v59 }
 0x113   : > { %v518_v1 = vrot.slane %v516_v62, 2  ;;  %v521_v2 = vrot.slane %v519_v63, 3 }
 0x115   : > { %v522_v3 = vor.u32 %v521_v2, %v518_v1 }
 0x117   : > { %1423 = vmatmul.mubr.msk.bf16.vlgmr.msra.gmra.mrb[0].mxu1 %vm364_vm1, %v522_v3 }
 0x1ea   : > { %v584_v4 = vpop.f32.mrb[0].mxu1 }
 0x1eb   : > { %v590_v5 = vpack.c.bf16 %v584_v4, %v584_v4  ;;  %831 = vrot.lane.b32.xlu0 %v584_v4, %s1541_s19  ;;  %v1424_v6 = vpop.f32.mrb[1].mxu1 }
 0x1ec   : > { %v587_v7 = vpop.f32.mrb[2].mxu1  ;;  %v848_v6 = vadd.s32 16, %v1680_v13 }
 0x1ed   : > { %v1425_v8 = vpop.f32.mrb[3].mxu1  ;;  %1429 = vmatmul.mubr.msk.bf16.vlgmr.msra.gmra.mrb[4].mxu0 %vm599_vm9, %v590_v5 }
 0x1ee   : > { %vm1802_vm13 = vcmp.eq.s32.totalorder %v1677_v12, %v848_v6 }
 0x25d   : > { %v832_v9 = vpop.permute.xlu0 %831 }
 0x25e   : > { %834 = vst.msk [vmem:[#allocation7] sm:$0xff] %vm385_vm2, %v832_v9 }
 0x265   : > { %v1694_v16 = vld [vmem:[#allocation7] ss:$0 sm:$0xff]  ;;  %v1696_v17 = vld [vmem:[#allocation7 + $0x1] ss:$0 sm:$0xff]  ;;  %v1698_v10 = vld [vmem:[#allocation7 + $0x5] ss:$0 sm:$0xff] }
 0x266   : > { %v857_v19 = vsel %vm1684_vm10, %v1694_v16, 0.0  ;;  %v856_v20 = vsel %vm1690_vm11, %v1694_v16, 0.0  ;;  %v907_v23 = vsel %vm1690_vm11, %v1696_v17, 0.0  ;;  %v1111_v25 = vsel %vm1690_vm11, %v1698_v10, 0.0  ;;  %v1714_v26 = vld [vmem:[#allocation7 + $0x6] ss:$0 sm:$0xff] }
 0x267   : > { %v861_v21 = vsel %vm385_vm2, %v857_v19, 0.0  ;;  %v858_v22 = vsel %vm385_vm2, %v856_v20, 0.0  ;;  %v909_v27 = vsel %vm385_vm2, %v907_v23, 0.0  ;;  %v1113_v28 = vsel %vm385_vm2, %v1111_v25, 0.0  ;;  %v1724_v31 = vld [vmem:[#allocation7 + $0x2] ss:$0 sm:$0xff] }
 0x268   : > { %862 = vadd.xlane.f32.xlu1 %v861_v21  ;;  %859 = vadd.xlane.f32.xlu0 %v858_v22  ;;  %v908_v29 = vsel %vm1684_vm10, %v1696_v17, 0.0  ;;  %v1162_v30 = vsel %vm1690_vm11, %v1714_v26, 0.0  ;;  %v1726_v32 = vld [vmem:[#allocation7 + $0x7] ss:$0 sm:$0xff]  ;;  %v958_v36 = vsel %vm1690_vm11, %v1724_v31, 0.0  ;;  %v959_v41 = vsel %vm1684_vm10, %v1724_v31, 0.0 }
 0x269   : > { %v912_v34 = vsel %vm385_vm2, %v908_v29, 0.0  ;;  %v1164_v35 = vsel %vm385_vm2, %v1162_v30, 0.0  ;;  %v1213_v37 = vsel %vm1690_vm11, %v1726_v32, 0.0  ;;  %v960_v39 = vsel %vm385_vm2, %v958_v36, 0.0  ;;  %v1382_v43 = vld [vmem:[#allocation7 + $0x3] ss:$0 sm:$0xff] }
 0x26a   : > { %v1215_v40 = vsel %vm385_vm2, %v1213_v37, 0.0  ;;  %v864_v42 = vsel %vm1738_vm12, %v1694_v16, 0.0  ;;  %v963_v44 = vsel %vm385_vm2, %v959_v41, 0.0  ;;  %v1009_v46 = vsel %vm1690_vm11, %v1382_v43, 0.0  ;;  %v1384_v52 = vld [vmem:[#allocation7 + $0x4] ss:$0 sm:$0xff] }
 0x26b   : > { %v866_v45 = vsel %vm385_vm2, %v864_v42, 0.0  ;;  %v915_v47 = vsel %vm1738_vm12, %v1696_v17, 0.0  ;;  %v1011_v48 = vsel %vm385_vm2, %v1009_v46, 0.0  ;;  %v1010_v50 = vsel %vm1684_vm10, %v1382_v43, 0.0 }
 0x26c   : > { %910 = vadd.xlane.f32.xlu1 %v909_v27  ;;  %1114 = vadd.xlane.f32.xlu0 %v1113_v28  ;;  %v917_v49 = vsel %vm385_vm2, %v915_v47, 0.0  ;;  %v966_v51 = vsel %vm1738_vm12, %v1724_v31, 0.0  ;;  %v1014_v53 = vsel %vm385_vm2, %v1010_v50, 0.0  ;;  %v1060_v55 = vsel %vm1690_vm11, %v1384_v52, 0.0 }
 0x26d   : > { %v968_v54 = vsel %vm385_vm2, %v966_v51, 0.0  ;;  %v1017_v56 = vsel %vm1738_vm12, %v1382_v43, 0.0  ;;  %v1062_v57 = vsel %vm385_vm2, %v1060_v55, 0.0  ;;  %v1061_v59 = vsel %vm1684_vm10, %v1384_v52, 0.0 }
 0x26e   : > { %v1019_v58 = vsel %vm385_vm2, %v1017_v56, 0.0  ;;  %v1068_v60 = vsel %vm1738_vm12, %v1384_v52, 0.0  ;;  %v1065_v61 = vsel %vm385_vm2, %v1061_v59, 0.0  ;;  %v1112_v63 = vsel %vm1684_vm10, %v1698_v10, 0.0 }
 0x26f   : > { %v1070_v62 = vsel %vm385_vm2, %v1068_v60, 0.0  ;;  %v1119_v1 = vsel %vm1738_vm12, %v1698_v10, 0.0  ;;  %v1116_v2 = vsel %vm385_vm2, %v1112_v63, 0.0  ;;  %v1163_v4 = vsel %vm1684_vm10, %v1714_v26, 0.0 }
 0x270   : > { %913 = vadd.xlane.f32.xlu1 %v912_v34  ;;  %1165 = vadd.xlane.f32.xlu0 %v1164_v35  ;;  %v1121_v3 = vsel %vm385_vm2, %v1119_v1, 0.0  ;;  %v1170_v5 = vsel %vm1738_vm12, %v1714_v26, 0.0  ;;  %v1167_v7 = vsel %vm385_vm2, %v1163_v4, 0.0  ;;  %v1214_v9 = vsel %vm1684_vm10, %v1726_v32, 0.0  ;;  %v662_v1 = vld [vmem:[%s1979_s7 + $0x8] sm:$0xff] }
 0x271   : > { %v1172_v8 = vsel %vm385_vm2, %v1170_v5, 0.0  ;;  %v1221_v15 = vsel %vm1738_vm12, %v1726_v32, 0.0  ;;  %v1218_v13 = vsel %vm385_vm2, %v1214_v9, 0.0  ;;  %v865_v14 = vsel %vm1802_vm13, %v1694_v16, 0.0 }
 0x272   : > { %v1223_v20 = vsel %vm385_vm2, %v1221_v15, 0.0  ;;  %v869_v21 = vsel %vm385_vm2, %v865_v14, 0.0  ;;  %v916_v12 = vsel %vm1802_vm13, %v1696_v17, 0.0  ;;  %v967_v23 = vsel %vm1802_vm13, %v1724_v31, 0.0 }
 0x273   : > { %v920_v22 = vsel %vm385_vm2, %v916_v12, 0.0  ;;  %v971_v25 = vsel %vm385_vm2, %v967_v23, 0.0  ;;  %v1018_v16 = vsel %vm1802_vm13, %v1382_v43, 0.0  ;;  %v1069_v28 = vsel %vm1802_vm13, %v1384_v52, 0.0 }
 0x274   : > { %961 = vadd.xlane.f32.xlu1 %v960_v39  ;;  %1216 = vadd.xlane.f32.xlu0 %v1215_v40  ;;  %v1022_v27 = vsel %vm385_vm2, %v1018_v16, 0.0  ;;  %v1073_v17 = vsel %vm385_vm2, %v1069_v28, 0.0  ;;  %v1120_v29 = vsel %vm1802_vm13, %v1698_v10, 0.0  ;;  %v1171_v31 = vsel %vm1802_vm13, %v1714_v26, 0.0 }
 0x275   : > { %v1124_v30 = vsel %vm385_vm2, %v1120_v29, 0.0  ;;  %v1175_v33 = vsel %vm385_vm2, %v1171_v31, 0.0  ;;  %v1222_v34 = vsel %vm1802_vm13, %v1726_v32, 0.0  ;;  %v1543_v32 = vmov 1966171168  }
 0x276   : > { %v1226_v35 = vsel %vm385_vm2, %v1222_v34, 0.0 }
 0x278   : > { %964 = vadd.xlane.f32.xlu1 %v963_v44  ;;  %867 = vadd.xlane.f32.xlu0 %v866_v45  ;;  %v666_v44 = vunpack.c.l.s4 %v1543_v32 }
 0x27a   : > { %v667_v46 = vunpack.c.0.s8 %v666_v44 }
 0x27c   : > { %1012 = vadd.xlane.f32.xlu1 %v1011_v48  ;;  %918 = vadd.xlane.f32.xlu0 %v917_v49  ;;  %v670_v51 = vsub.s32 %v667_v46, %v1649_v11  ;;  %v661_v11 = vld [vmem:[%s1979_s7] sm:$0xff] }
 0x280   : > { %1015 = vadd.xlane.f32.xlu1 %v1014_v53  ;;  %969 = vadd.xlane.f32.xlu0 %v968_v54 }
 0x284   : > { %1063 = vadd.xlane.f32.xlu1 %v1062_v57  ;;  %1020 = vadd.xlane.f32.xlu0 %v1019_v58 }
 0x288   : > { %1066 = vadd.xlane.f32.xlu1 %v1065_v61  ;;  %1071 = vadd.xlane.f32.xlu0 %v1070_v62 }
 0x28c   : > { %1117 = vadd.xlane.f32.xlu1 %v1116_v2  ;;  %1122 = vadd.xlane.f32.xlu0 %v1121_v3 }
 0x290   : > { %1168 = vadd.xlane.f32.xlu1 %v1167_v7  ;;  %1173 = vadd.xlane.f32.xlu0 %v1172_v8 }
 0x294   : > { %1219 = vadd.xlane.f32.xlu1 %v1218_v13  ;;  %1224 = vadd.xlane.f32.xlu0 %v1223_v20 }
 0x298   : > { %870 = vadd.xlane.f32.xlu1 %v869_v21 }
 0x29c   : > { %921 = vadd.xlane.f32.xlu1 %v920_v22 }
 0x2a0   : > { %972 = vadd.xlane.f32.xlu1 %v971_v25 }
 0x2a4   : > { %1023 = vadd.xlane.f32.xlu1 %v1022_v27 }
 0x2a8   : > { %1074 = vadd.xlane.f32.xlu1 %v1073_v17 }
 0x2aa   : > { %836 = vrot.lane.b32.xlu0 %v1661_v24, %s1542_s20  ;;  %v1374_v24 = vld [vmem:[%s1978_s6] ss:$0 sm:$0xff] }
 0x2ac   : > { %1125 = vadd.xlane.f32.xlu1 %v1124_v30 }
 0x2b0   : > { %1176 = vadd.xlane.f32.xlu1 %v1175_v33 }
 0x2b4   : > { %1227 = vadd.xlane.f32.xlu1 %v1226_v35 }
 0x2c0   : > { %v641_v10 = vpop.f32.mrb[4].mxu0 }
 0x2c1   : > { %v642_v36 = vadd.f32 %v1374_v24, %v641_v10  ;;  %v1430_v37 = vpop.f32.mrb[5].mxu0 }
 0x2c2   : > { %v644_v38 = vpop.f32.mrb[6].mxu0 }
 0x2c3   : > { %v648_v39 = vmin.f32 %v642_v36, 20.0  ;;  %v1431_v26 = vpop.f32.mrb[7].mxu0  ;;  %vm647_vm15 = vcmp.gt.f32.partialorder %v642_v36, 20.0 }
 0x2c5   : > { %v649_v40 = vmul.f32 1.442695, %v648_v39 }
 0x2c7   : > { %1475 = vpow2.f32 %v649_v40 }
 0x2d1   : > { %v1476_v41 = vpop.eup %1475 }
 0x2d2   : > { %v651_v42 = vadd.f32 1.0, %v1476_v41  ;;  %v654_v43 = vmul.f32 -0.5, %v1476_v41  ;;  %v657_v47 = vand.u32 2147483647, %v1476_v41 }
 0x2d4   : > { %1477 = vlog2.f32 %v651_v42  ;;  %v655_v45 = vadd.f32 1.0, %v654_v43  ;;  %vm658_vm14 = vcmp.lt.f32.partialorder %v657_v47, 0.0004427343 }
 0x2d6   : > { %v656_v50 = vmul.f32 %v1476_v41, %v655_v45 }
 0x2de   : > { %v1478_v48 = vpop.eup %1477 }
 0x2df   : > { %v653_v49 = vmul.f32 0.6931472, %v1478_v48 }
 0x2e1   : > { %v659_v52 = vsel %vm658_vm14, %v656_v50, %v653_v49 }
 0x2e2   : > { %v660_v53 = vsel %vm647_vm15, %v642_v36, %v659_v52 }
 0x2e3   : > { %v664_v54 = vcombine.high %v660_v53, %v660_v53  ;;  %v671_v55 = vrot.slane %v660_v53, %v670_v51  ;;  %v828_v56 = vmul.f32 %v1672_v0, %v660_v53 }
 0x2e5   : > { %v678_v57 = vrot.slane %v664_v54, %v670_v51  ;;  %v679_v58 = vcombine.high %v671_v55, %v671_v55  ;;  %v687_v59 = vrot.slane %v671_v55, %v670_v51  ;;  %829 = vst.msk [vmem:[#allocation5] sm:$0xff] %vm364_vm1, %v828_v56 }
 0x2e7   : > { %v680_v60 = vcombine.high %v678_v57, %v678_v57  ;;  %v701_v61 = vrot.slane %v679_v58, %v670_v51  ;;  %v709_v62 = vcombine.high %v687_v59, %v687_v59  ;;  %v716_v63 = vrot.slane %v687_v59, %v1657_v18 }
 0x2e8   : > { %v694_v2 = vrot.slane %v678_v57, %v670_v51 }
 0x2e9   : > { %v711_v0 = vcombine.high %v701_v61, %v701_v61  ;;  %v720_v3 = vrot.slane %v701_v61, %v1657_v18  ;;  %v724_v4 = vrot.slane %v709_v62, %v1657_v18  ;;  %v708_v5 = vrot.slane %v680_v60, %v670_v51  ;;  %v874_v61 = vld [vmem:[#allocation3] sm:$0xff] }
 0x2ea   : > { %v753_v7 = vmul.f32 %v716_v63, %v661_v11  ;;  %v754_v8 = vmul.f32 %v716_v63, %v662_v1  ;;  %v710_v19 = vcombine.high %v694_v2, %v694_v2  ;;  %v732_v13 = vrot.slane %v694_v2, %v1657_v18 }
 0x2eb   : > { %v728_v6 = vrot.slane %v711_v0, %v1657_v18  ;;  %v755_v9 = vmul.f32 %v720_v3, %v661_v11  ;;  %v756_v15 = vmul.f32 %v720_v3, %v662_v1  ;;  %v757_v20 = vmul.f32 %v724_v4, %v661_v11 }
 0x2ec   : > { %v758_v14 = vmul.f32 %v724_v4, %v662_v1  ;;  %v712_v21 = vcombine.high %v708_v5, %v708_v5  ;;  %v736_v12 = vrot.slane %v708_v5, %v1657_v18  ;;  %v769_v23 = vmul.f32 1.442695, %v753_v7 }
 0x2ed   : > { %v759_v22 = vmul.f32 %v728_v6, %v661_v11  ;;  %v760_v25 = vmul.f32 %v728_v6, %v662_v1  ;;  %v771_v16 = vmul.f32 1.442695, %v754_v8  ;;  %v773_v27 = vmul.f32 1.442695, %v755_v9 }
 0x2ee   : > { %v775_v28 = vmul.f32 1.442695, %v756_v15  ;;  %v740_v17 = vrot.slane %v710_v19, %v1657_v18  ;;  %v761_v29 = vmul.f32 %v732_v13, %v661_v11  ;;  %1479 = vpow2.f32 %v769_v23 }
 0x2ef   : > { %v777_v30 = vmul.f32 1.442695, %v757_v20  ;;  %v762_v31 = vmul.f32 %v732_v13, %v662_v1  ;;  %1481 = vpow2.f32 %v771_v16  ;;  %v779_v33 = vmul.f32 1.442695, %v758_v14 }
 0x2f0   : > { %v744_v34 = vrot.slane %v712_v21, %v1657_v18  ;;  %v763_v35 = vmul.f32 %v736_v12, %v661_v11  ;;  %1483 = vpow2.f32 %v773_v27  ;;  %v781_v24 = vmul.f32 1.442695, %v759_v22 }
 0x2f1   : > { %v764_v10 = vmul.f32 %v736_v12, %v662_v1  ;;  %1485 = vpow2.f32 %v775_v28  ;;  %v783_v36 = vmul.f32 1.442695, %v760_v25  ;;  %v765_v37 = vmul.f32 %v740_v17, %v661_v11  ;;  %v1379_v28 = vld [vmem:[#allocation5 + $0x1] ss:$0 sm:$0xff] }
 0x2f2   : > { %1487 = vpow2.f32 %v777_v30  ;;  %v785_v38 = vmul.f32 1.442695, %v761_v29  ;;  %v766_v40 = vmul.f32 %v740_v17, %v662_v1  ;;  %v787_v41 = vmul.f32 1.442695, %v762_v31 }
 0x2f3   : > { %1489 = vpow2.f32 %v779_v33  ;;  %v767_v42 = vmul.f32 %v744_v34, %v661_v11  ;;  %v789_v43 = vmul.f32 1.442695, %v763_v35  ;;  %v768_v32 = vmul.f32 %v744_v34, %v662_v1  ;;  %v875_v11 = vld [vmem:[#allocation3 + $0x8] sm:$0xff]  ;;  %v1377_v1 = vld [vmem:[#allocation5] ss:$0 sm:$0xff] }
 0x2f4   : > { %1491 = vpow2.f32 %v781_v24  ;;  %v791_v18 = vmul.f32 1.442695, %v764_v10  ;;  %v793_v44 = vmul.f32 1.442695, %v765_v37  ;;  %v795_v47 = vmul.f32 1.442695, %v766_v40 }
 0x2f5   : > { %v863_v39 = vpop.xlane.xlu1 %862  ;;  %v860_v26 = vpop.xlane.xlu0 %859  ;;  %1493 = vpow2.f32 %v783_v36  ;;  %v797_v49 = vmul.f32 1.442695, %v767_v42  ;;  %v799_v51 = vmul.f32 1.442695, %v768_v32  ;;  %v1381_v42 = vld [vmem:[#allocation5 + $0x2] ss:$0 sm:$0xff] }
 0x2f6   : > { %1495 = vpow2.f32 %v785_v38  ;;  %v883_v3 = vmul.f32 %v1377_v1, %v860_v26  ;;  %v884_v7 = vmul.f32 %v1377_v1, %v863_v39 }
 0x2f7   : > { %1497 = vpow2.f32 %v787_v41 }
 0x2f8   : > { %v1480_v48 = vpop.eup %1479  ;;  %1499 = vpow2.f32 %v789_v43 }
 0x2f9   : > { %v1859_v45 = vpop.xlane.xlu1 %910  ;;  %v1861_v46 = vpop.xlane.xlu0 %1114  ;;  %1501 = vpow2.f32 %v791_v18  ;;  %801 = vst.msk [vmem:[#allocation8] sm:$0xff] %vm364_vm1, %v1480_v48 }
 0x2fa   : > { %v1482_v50 = vpop.eup %1481  ;;  %1503 = vpow2.f32 %v793_v44  ;;  %v935_v30 = vmul.f32 %v1379_v28, %v1859_v45 }
 0x2fb   : > { %v1484_v52 = vpop.eup %1483  ;;  %802 = vst.msk [vmem:[#allocation8 + $0x8] sm:$0xff] %vm364_vm1, %v1482_v50  ;;  %1505 = vpow2.f32 %v795_v47 }
 0x2fc   : > { %v1486_v55 = vpop.eup %1485  ;;  %803 = vst.msk [vmem:[#allocation8 + $0x10] sm:$0xff] %vm364_vm1, %v1484_v52  ;;  %1507 = vpow2.f32 %v797_v49 }
 0x2fd   : > { %v914_v53 = vpop.xlane.xlu1 %913  ;;  %v1865_v54 = vpop.xlane.xlu0 %1165  ;;  %804 = vst.msk [vmem:[#allocation8 + $0x18] sm:$0xff] %vm364_vm1, %v1486_v55  ;;  %1509 = vpow2.f32 %v799_v51 }
 0x2fe   : > { %v1488_v56 = vpop.eup %1487  ;;  %v936_v35 = vmul.f32 %v1379_v28, %v914_v53 }
 0x2ff   : > { %v1490_v57 = vpop.eup %1489  ;;  %805 = vst.msk [vmem:[#allocation8 + $0x20] sm:$0xff] %vm364_vm1, %v1488_v56 }
 0x300   : > { %v1492_v58 = vpop.eup %1491  ;;  %806 = vst.msk [vmem:[#allocation8 + $0x28] sm:$0xff] %vm364_vm1, %v1490_v57  ;;  %v872_v2 = vld [vmem:[#allocation8] sm:$0xff] }
 0x301   : > { %v962_v59 = vpop.xlane.xlu1 %961  ;;  %v1871_v60 = vpop.xlane.xlu0 %1216  ;;  %807 = vst.msk [vmem:[#allocation8 + $0x30] sm:$0xff] %vm364_vm1, %v1492_v58  ;;  %v876_v4 = vmul.f32 %v874_v61, %v872_v2 }
 0x302   : > { %v1494_v62 = vpop.eup %1493  ;;  %v873_v5 = vld [vmem:[#allocation8 + $0x8] sm:$0xff]  ;;  %v986_v18 = vmul.f32 %v1381_v42, %v962_v59 }
 0x303   : > { %v1496_v63 = vpop.eup %1495  ;;  %808 = vst.msk [vmem:[#allocation8 + $0x38] sm:$0xff] %vm364_vm1, %v1494_v62  ;;  %v877_v15 = vmul.f32 %v875_v11, %v873_v5  ;;  %v885_v13 = vadd.f32 %v883_v3, %v876_v4  ;;  %v924_v17 = vld [vmem:[#allocation8 + $0x10] sm:$0xff]  ;;  %v1383_v11 = vld [vmem:[#allocation5 + $0x3] ss:$0 sm:$0xff] }
 0x304   : > { %v1498_v0 = vpop.eup %1497  ;;  %809 = vst.msk [vmem:[#allocation8 + $0x40] sm:$0xff] %vm364_vm1, %v1496_v63  ;;  %v925_v33 = vld [vmem:[#allocation8 + $0x18] sm:$0xff] }
 0x305   : > { %v1500_v6 = vpop.eup %1499  ;;  %810 = vst.msk [vmem:[#allocation8 + $0x48] sm:$0xff] %vm364_vm1, %v1498_v0  ;;  %v965_v8 = vpop.xlane.xlu1 %964  ;;  %v886_v14 = vadd.f32 %v884_v7, %v877_v15  ;;  %887 = vst.msk [vmem:[#allocation3] sm:$0xff] %vm364_vm1, %v885_v13 }
 0x306   : > { %v868_v9 = vpop.xlane.xlu0 %867  ;;  %v1502_v19 = vpop.eup %1501  ;;  %811 = vst.msk [vmem:[#allocation8 + $0x50] sm:$0xff] %vm364_vm1, %v1500_v6  ;;  %v975_v43 = vld [vmem:[#allocation8 + $0x20] sm:$0xff]  ;;  %v987_v48 = vmul.f32 %v1381_v42, %v965_v8 }
 0x307   : > { %v1504_v20 = vpop.eup %1503  ;;  %812 = vst.msk [vmem:[#allocation8 + $0x58] sm:$0xff] %vm364_vm1, %v1502_v19  ;;  %888 = vst.msk [vmem:[#allocation3 + $0x8] sm:$0xff] %vm364_vm1, %v886_v14  ;;  %v976_v45 = vld [vmem:[#allocation8 + $0x28] sm:$0xff]  ;;  %v889_v57 = vmul.f32 %v885_v13, %v868_v9 }
 0x308   : > { %v1506_v21 = vpop.eup %1505  ;;  %813 = vst.msk [vmem:[#allocation8 + $0x60] sm:$0xff] %vm364_vm1, %v1504_v20  ;;  %v1026_v63 = vld [vmem:[#allocation8 + $0x30] sm:$0xff] }
 0x309   : > { %v1508_v12 = vpop.eup %1507  ;;  %814 = vst.msk [vmem:[#allocation8 + $0x68] sm:$0xff] %vm364_vm1, %v1506_v21  ;;  %v1013_v22 = vpop.xlane.xlu1 %1012  ;;  %v891_v62 = vsel %vm364_vm1, %v889_v57, 0.0 }
 0x30a   : > { %v919_v23 = vpop.xlane.xlu0 %918  ;;  %v1510_v25 = vpop.eup %1509  ;;  %815 = vst.msk [vmem:[#allocation8 + $0x70] sm:$0xff] %vm364_vm1, %v1508_v12  ;;  %v1037_v2 = vmul.f32 %v1383_v11, %v1013_v22  ;;  %v1027_v5 = vld [vmem:[#allocation8 + $0x38] sm:$0xff] }
 0x30b   : > { %816 = vst.msk [vmem:[#allocation8 + $0x78] sm:$0xff] %vm364_vm1, %v1510_v25  ;;  %v1077_v42 = vld [vmem:[#allocation8 + $0x40] sm:$0xff] }
 0x30c   : > { %v926_v29 = vld [vmem:[#allocation3] sm:$0xff] }
 0x30d   : > { %v1016_v16 = vpop.xlane.xlu1 %1015  ;;  %v928_v31 = vmul.f32 %v926_v29, %v924_v17 }
 0x30e   : > { %v970_v27 = vpop.xlane.xlu0 %969  ;;  %v927_v34 = vld [vmem:[#allocation3 + $0x8] sm:$0xff]  ;;  %v1038_v7 = vmul.f32 %v1383_v11, %v1016_v16 }
 0x30f   : > { %v929_v36 = vmul.f32 %v927_v34, %v925_v33  ;;  %v937_v37 = vadd.f32 %v935_v30, %v928_v31 }
 0x311   : > { %v1886_v24 = vpop.xlane.xlu1 %1063  ;;  %v938_v38 = vadd.f32 %v936_v35, %v929_v36  ;;  %939 = vst.msk [vmem:[#allocation3] sm:$0xff] %vm364_vm1, %v937_v37  ;;  %v941_v0 = vmul.f32 %v937_v37, %v919_v23  ;;  %v1385_v37 = vld [vmem:[#allocation5 + $0x4] ss:$0 sm:$0xff] }
 0x312   : > { %v1021_v10 = vpop.xlane.xlu0 %1020 }
 0x313   : > { %940 = vst.msk [vmem:[#allocation3 + $0x8] sm:$0xff] %vm364_vm1, %v938_v38  ;;  %v943_v21 = vsel %vm364_vm1, %v941_v0, 0.0 }
 0x315   : > { %v1889_v39 = vpop.xlane.xlu1 %1066 }
 0x316   : > { %v1891_v26 = vpop.xlane.xlu0 %1071 }
 0x318   : > { %v977_v32 = vld [vmem:[#allocation3] sm:$0xff] }
 0x319   : > { %v1894_v40 = vpop.xlane.xlu1 %1117  ;;  %v979_v44 = vmul.f32 %v977_v32, %v975_v43 }
 0x31a   : > { %v1896_v41 = vpop.xlane.xlu0 %1122  ;;  %v978_v47 = vld [vmem:[#allocation3 + $0x8] sm:$0xff] }
 0x31b   : > { %v980_v51 = vmul.f32 %v978_v47, %v976_v45  ;;  %v988_v52 = vadd.f32 %v986_v18, %v979_v44  ;;  %v1088_v45 = vmul.f32 %v1385_v37, %v1886_v24 }
 0x31d   : > { %v1898_v49 = vpop.xlane.xlu1 %1168  ;;  %v989_v53 = vadd.f32 %v987_v48, %v980_v51  ;;  %990 = vst.msk [vmem:[#allocation3] sm:$0xff] %vm364_vm1, %v988_v52  ;;  %v992_v12 = vmul.f32 %v988_v52, %v970_v27 }
 0x31e   : > { %v1900_v50 = vpop.xlane.xlu0 %1173 }
 0x31f   : > { %991 = vst.msk [vmem:[#allocation3 + $0x8] sm:$0xff] %vm364_vm1, %v989_v53  ;;  %v994_v30 = vsel %vm364_vm1, %v992_v12, 0.0 }
 0x321   : > { %v1903_v55 = vpop.xlane.xlu1 %1219 }
 0x322   : > { %v1905_v56 = vpop.xlane.xlu0 %1224 }
 0x324   : > { %v1028_v1 = vld [vmem:[#allocation3] sm:$0xff] }
 0x325   : > { %v871_v58 = vpop.xlane.xlu1 %870  ;;  %v1030_v3 = vmul.f32 %v1028_v1, %v1026_v63 }
 0x326   : > { %v837_v59 = vpop.permute.xlu0 %836  ;;  %v890_v61 = vmul.f32 %v886_v14, %v871_v58  ;;  %v1029_v6 = vld [vmem:[#allocation3 + $0x8] sm:$0xff] }
 0x327   : > { %839 = vst.msk [vmem:[#allocation6] sm:$0xff] %vm364_vm1, %v837_v59  ;;  %v1031_v15 = vmul.f32 %v1029_v6, %v1027_v5  ;;  %v1039_v19 = vadd.f32 %v1037_v2, %v1030_v3  ;;  %v1078_v59 = vld [vmem:[#allocation8 + $0x48] sm:$0xff] }
 0x328   : > { %v892_v4 = vsel %vm364_vm1, %v890_v61, 0.0  ;;  %v1089_v61 = vmul.f32 %v1385_v37, %v1889_v39 }
 0x329   : > { %v893_v8 = vadd.f32 %v892_v4, %v891_v62  ;;  %v922_v9 = vpop.xlane.xlu1 %921  ;;  %v1040_v14 = vadd.f32 %v1038_v7, %v1031_v15  ;;  %1041 = vst.msk [vmem:[#allocation3] sm:$0xff] %vm364_vm1, %v1039_v19  ;;  %v1043_v31 = vmul.f32 %v1039_v19, %v1021_v10 }
 0x32a   : > { %v942_v13 = vmul.f32 %v938_v38, %v922_v9 }
 0x32b   : > { %v894_v20 = vrot.slane %v893_v8, 4  ;;  %1042 = vst.msk [vmem:[#allocation3 + $0x8] sm:$0xff] %vm364_vm1, %v1040_v14  ;;  %v1045_v47 = vsel %vm364_vm1, %v1043_v31, 0.0 }
 0x32c   : > { %v944_v22 = vsel %vm364_vm1, %v942_v13, 0.0 }
 0x32d   : > { %v895_v23 = vadd.f32 %v894_v20, %v893_v8  ;;  %v945_v25 = vadd.f32 %v944_v22, %v943_v21  ;;  %v973_v28 = vpop.xlane.xlu1 %972 }
 0x32e   : > { %v993_v16 = vmul.f32 %v989_v53, %v973_v28 }
 0x32f   : > { %v896_v17 = vrot.slane %v895_v23, 2  ;;  %v946_v29 = vrot.slane %v945_v25, 4 }
 0x330   : > { %v995_v33 = vsel %vm364_vm1, %v993_v16, 0.0  ;;  %v1079_v43 = vld [vmem:[#allocation3] sm:$0xff] }
 0x331   : > { %v897_v34 = vadd.f32 %v896_v17, %v895_v23  ;;  %v947_v35 = vadd.f32 %v946_v29, %v945_v25  ;;  %v996_v27 = vadd.f32 %v995_v33, %v994_v30  ;;  %v1024_v36 = vpop.xlane.xlu1 %1023  ;;  %v1081_v48 = vmul.f32 %v1079_v43, %v1077_v42  ;;  %v1129_v17 = vld [vmem:[#allocation8 + $0x58] sm:$0xff] }
 0x332   : > { %v1044_v38 = vmul.f32 %v1040_v14, %v1024_v36  ;;  %v1080_v51 = vld [vmem:[#allocation3 + $0x8] sm:$0xff]  ;;  %v1387_v14 = vld [vmem:[#allocation5 + $0x5] ss:$0 sm:$0xff] }
 0x333   : > { %v898_v32 = vrot.slane %v897_v34, 1  ;;  %v948_v18 = vrot.slane %v947_v35, 2  ;;  %v997_v44 = vrot.slane %v996_v27, 4  ;;  %v1090_v62 = vadd.f32 %v1088_v45, %v1081_v48 }
 0x334   : > { %v1046_v10 = vsel %vm364_vm1, %v1044_v38, 0.0  ;;  %v1082_v11 = vmul.f32 %v1080_v51, %v1078_v59  ;;  %v1139_v23 = vmul.f32 %v1387_v14, %v1861_v46  ;;  %v1140_v30 = vmul.f32 %v1387_v14, %v1894_v40  ;;  %v1180_v51 = vld [vmem:[#allocation8 + $0x68] sm:$0xff] }
 0x335   : > { %v899_v52 = vadd.f32 %v898_v32, %v897_v34  ;;  %v949_v53 = vadd.f32 %v948_v18, %v947_v35  ;;  %v998_v57 = vadd.f32 %v997_v44, %v996_v27  ;;  %v1047_v58 = vadd.f32 %v1046_v10, %v1045_v47  ;;  %v1075_v2 = vpop.xlane.xlu1 %1074  ;;  %1092 = vst.msk [vmem:[#allocation3] sm:$0xff] %vm364_vm1, %v1090_v62  ;;  %v1389_v18 = vld [vmem:[#allocation5 + $0x6] ss:$0 sm:$0xff]  ;;  %v1179_v44 = vld [vmem:[#allocation8 + $0x60] sm:$0xff] }
 0x336   : > { %v1094_v0 = vmul.f32 %v1090_v62, %v1891_v26  ;;  %v1091_v3 = vadd.f32 %v1089_v61, %v1082_v11  ;;  %v1128_v26 = vld [vmem:[#allocation8 + $0x50] sm:$0xff] }
 0x337   : > { %901 = vst.msk [vmem:[#allocation9] sm:$0x1] %vm900_vm0, %v899_v52  ;;  %v950_v63 = vrot.slane %v949_v53, 1  ;;  %v999_v1 = vrot.slane %v998_v57, 2  ;;  %v1048_v24 = vrot.slane %v1047_v58, 4 }
 0x338   : > { %1093 = vst.msk [vmem:[#allocation3 + $0x8] sm:$0xff] %vm364_vm1, %v1091_v3  ;;  %v1095_v7 = vmul.f32 %v1091_v3, %v1075_v2  ;;  %v1096_v9 = vsel %vm364_vm1, %v1094_v0, 0.0 }
 0x339   : > { %v951_v4 = vadd.f32 %v950_v63, %v949_v53  ;;  %v1000_v5 = vadd.f32 %v999_v1, %v998_v57  ;;  %v1049_v6 = vadd.f32 %v1048_v24, %v1047_v58  ;;  %v1126_v37 = vpop.xlane.xlu1 %1125  ;;  %v1191_v53 = vmul.f32 %v1389_v18, %v1898_v49  ;;  %v1270_v24 = vld [vmem:[#allocation6] sm:$0xff] }
 0x33a   : > { %v1097_v15 = vsel %vm364_vm1, %v1095_v7, 0.0  ;;  %v1393_v49 = vmul.f32 -1.442695, %v1270_v24 }
 0x33b   : > { %952 = vst.msk [vmem:[#allocation9 + $0x1] sm:$0x1] %vm900_vm0, %v951_v4  ;;  %v1001_v39 = vrot.slane %v1000_v5, 1  ;;  %v1050_v8 = vrot.slane %v1049_v6, 2  ;;  %v1098_v20 = vadd.f32 %v1097_v15, %v1096_v9  ;;  %v1231_v15 = vld [vmem:[#allocation8 + $0x78] sm:$0xff] }
 0x33c   : > { %v1130_v21 = vld [vmem:[#allocation3] sm:$0xff]  ;;  %1511 = vpow2.f32 %v1393_v49 }
 0x33d   : > { %v1002_v19 = vadd.f32 %v1001_v39, %v1000_v5  ;;  %v1051_v13 = vadd.f32 %v1050_v8, %v1049_v6  ;;  %v1099_v22 = vrot.slane %v1098_v20, 4  ;;  %v1132_v25 = vmul.f32 %v1130_v21, %v1128_v26  ;;  %v1177_v63 = vpop.xlane.xlu1 %1176  ;;  %v1391_v5 = vld [vmem:[#allocation5 + $0x7] ss:$0 sm:$0xff]  ;;  %v1230_v6 = vld [vmem:[#allocation8 + $0x70] sm:$0xff] }
 0x33e   : > { %v1241_v39 = vmul.f32 %v1391_v5, %v1871_v60 }
 0x33f   : > { %1003 = vst.msk [vmem:[#allocation9 + $0x2] sm:$0x1] %vm900_vm0, %v1002_v19  ;;  %v1052_v12 = vrot.slane %v1051_v13, 1  ;;  %v1100_v16 = vadd.f32 %v1099_v22, %v1098_v20  ;;  %v1131_v29 = vld [vmem:[#allocation3 + $0x8] sm:$0xff]  ;;  %v1141_v31 = vadd.f32 %v1139_v23, %v1132_v25 }
 0x340   : > { %v1133_v33 = vmul.f32 %v1131_v29, %v1129_v17 }
 0x341   : > { %v1053_v28 = vadd.f32 %v1052_v12, %v1051_v13  ;;  %v1101_v34 = vrot.slane %v1100_v16, 2  ;;  %1143 = vst.msk [vmem:[#allocation3] sm:$0xff] %vm364_vm1, %v1141_v31  ;;  %v1145_v35 = vmul.f32 %v1141_v31, %v1896_v41  ;;  %v1190_v41 = vmul.f32 %v1389_v18, %v1865_v54  ;;  %v1228_v23 = vpop.xlane.xlu1 %1227 }
 0x342   : > { %v1142_v27 = vadd.f32 %v1140_v30, %v1133_v33  ;;  %v1242_v13 = vmul.f32 %v1391_v5, %v1903_v55 }
 0x343   : > { %1054 = vst.msk [vmem:[#allocation9 + $0x3] sm:$0x1] %vm900_vm0, %v1053_v28  ;;  %v1102_v36 = vadd.f32 %v1101_v34, %v1100_v16  ;;  %v1147_v46 = vsel %vm364_vm1, %v1145_v35, 0.0 }
 0x344   : > { %1144 = vst.msk [vmem:[#allocation3 + $0x8] sm:$0xff] %vm364_vm1, %v1142_v27  ;;  %v1146_v38 = vmul.f32 %v1142_v27, %v1126_v37  ;;  %v1392_v37 = vld [vmem:[%s1980_s8] ss:$0 sm:$0xff] }
 0x345   : > { %v1103_v42 = vrot.slane %v1102_v36, 1 }
 0x346   : > { %v1148_v40 = vsel %vm364_vm1, %v1146_v38, 0.0  ;;  %v1512_v29 = vpop.eup %1511 }
 0x347   : > { %v1104_v43 = vadd.f32 %v1103_v42, %v1102_v36  ;;  %v1149_v32 = vadd.f32 %v1148_v40, %v1147_v46  ;;  %v1259_v36 = vld [vmem:[#allocation4] sm:$0xff] }
 0x348   : > { %v1181_v45 = vld [vmem:[#allocation3] sm:$0xff]  ;;  %v1268_v38 = vmul.f32 %v1392_v37, %v1259_v36 }
 0x349   : > { %1105 = vst.msk [vmem:[#allocation9 + $0x4] sm:$0x1] %vm900_vm0, %v1104_v43  ;;  %v1150_v47 = vrot.slane %v1149_v32, 4  ;;  %v1183_v48 = vmul.f32 %v1181_v45, %v1179_v44 }
 0x34b   : > { %v1151_v10 = vadd.f32 %v1150_v47, %v1149_v32  ;;  %v1182_v52 = vld [vmem:[#allocation3 + $0x8] sm:$0xff]  ;;  %v1192_v57 = vadd.f32 %v1190_v41, %v1183_v48 }
 0x34c   : > { %v1184_v58 = vmul.f32 %v1182_v52, %v1180_v51 }
 0x34d   : > { %v1152_v59 = vrot.slane %v1151_v10, 2  ;;  %1194 = vst.msk [vmem:[#allocation3] sm:$0xff] %vm364_vm1, %v1192_v57  ;;  %v1196_v61 = vmul.f32 %v1192_v57, %v1900_v50 }
 0x34e   : > { %v1193_v62 = vadd.f32 %v1191_v53, %v1184_v58 }
 0x34f   : > { %v1153_v11 = vadd.f32 %v1152_v59, %v1151_v10  ;;  %v1198_v1 = vsel %vm364_vm1, %v1196_v61, 0.0 }
 0x350   : > { %1195 = vst.msk [vmem:[#allocation3 + $0x8] sm:$0xff] %vm364_vm1, %v1193_v62  ;;  %v1197_v54 = vmul.f32 %v1193_v62, %v1177_v63 }
 0x351   : > { %v1154_v2 = vrot.slane %v1153_v11, 1 }
 0x352   : > { %v1199_v0 = vsel %vm364_vm1, %v1197_v54, 0.0 }
 0x353   : > { %v1155_v3 = vadd.f32 %v1154_v2, %v1153_v11  ;;  %v1200_v4 = vadd.f32 %v1199_v0, %v1198_v1 }
 0x354   : > { %v1232_v7 = vld [vmem:[#allocation3] sm:$0xff] }
 0x355   : > { %1156 = vst.msk [vmem:[#allocation9 + $0x5] sm:$0x1] %vm900_vm0, %v1155_v3  ;;  %v1201_v50 = vrot.slane %v1200_v4, 4  ;;  %v1234_v8 = vmul.f32 %v1232_v7, %v1230_v6 }
 0x357   : > { %v1202_v9 = vadd.f32 %v1201_v50, %v1200_v4  ;;  %v1233_v19 = vld [vmem:[#allocation3 + $0x8] sm:$0xff]  ;;  %v1243_v20 = vadd.f32 %v1241_v39, %v1234_v8 }
 0x358   : > { %v1235_v14 = vmul.f32 %v1233_v19, %v1231_v15 }
 0x359   : > { %v1203_v26 = vrot.slane %v1202_v9, 2  ;;  %1245 = vst.msk [vmem:[#allocation3] sm:$0xff] %vm364_vm1, %v1243_v20  ;;  %v1247_v21 = vmul.f32 %v1243_v20, %v1905_v56  ;;  %v1274_v56 = vadd.f32 1.0, %v1512_v29 }
 0x35a   : > { %v1244_v12 = vadd.f32 %v1242_v13, %v1235_v14 }
 0x35b   : > { %v1204_v22 = vadd.f32 %v1203_v26, %v1202_v9  ;;  %v1249_v25 = vsel %vm364_vm1, %v1247_v21, 0.0  ;;  %1513 = vrcp.f32 %v1274_v56 }
 0x35c   : > { %1246 = vst.msk [vmem:[#allocation3 + $0x8] sm:$0xff] %vm364_vm1, %v1244_v12  ;;  %v1248_v60 = vmul.f32 %v1244_v12, %v1228_v23 }
 0x35d   : > { %v1205_v28 = vrot.slane %v1204_v22, 1 }
 0x35e   : > { %v1250_v16 = vsel %vm364_vm1, %v1248_v60, 0.0  ;;  %vm1280_vm1 = vcmask 519168  }
 0x35f   : > { %v1206_v17 = vadd.f32 %v1205_v28, %v1204_v22  ;;  %v1251_v55 = vadd.f32 %v1250_v16, %v1249_v25 }
 0x361   : > { %1207 = vst.msk [vmem:[#allocation9 + $0x6] sm:$0x1] %vm900_vm0, %v1206_v17  ;;  %v1252_v30 = vrot.slane %v1251_v55, 4 }
 0x363   : > { %v1253_v31 = vadd.f32 %v1252_v30, %v1251_v55 }
 0x365   : > { %v1254_v33 = vrot.slane %v1253_v31, 2  ;;  %v1514_v46 = vpop.eup %1513 }
 0x366   : > { %v1277_v40 = vmul.f32 %v1514_v46, %v1270_v24 }
 0x367   : > { %v1255_v34 = vadd.f32 %v1254_v33, %v1253_v31 }
 0x369   : > { %v1256_v35 = vrot.slane %v1255_v34, 1 }
 0x36b   : > { %v1257_v27 = vadd.f32 %v1256_v35, %v1255_v34 }
 0x36d   : > { %1258 = vst.msk [vmem:[#allocation9 + $0x7] sm:$0x1] %vm900_vm0, %v1257_v27 }
 0x374   : > { %v1260_v42 = vld [vmem:[#allocation9] sm:$0xff] }
 0x375   : > { %v1269_v43 = vadd.f32 %v1268_v38, %v1260_v42 }
 0x377   : > { %v1278_v32 = vmul.f32 %v1277_v40, %v1269_v43 }
 0x379   : > { %v1279_v18 = vpack.c.bf16 %v1278_v32, %v1278_v32 }
 0x37b   : > { %1281 = vst.msk [vmem:[%s358_s14] sm:$0xf] %vm1280_vm1, %v1279_v18 }
 0x37c PF: > { %s19_s11 = sadd.s32 1, %s1537_s11   ;;  %s1990_s30 = smov %s1533_s10 }
 0x37d   : > { %p16_p5 = scmp.ge.s32.totalorder %s19_s11, 4   ;;  %s1991_s10 = smov %s1993_s12 }
 0x37f   :  { %18 = sbr.rel (!%p16_p5) target bundleno = 2 (0x2), region = 97 }

</bundles_post_ra>
